<compile_context>
chip_gen: v7x
topology: tpu7x:2x2x1
jax: 0.10.0
libtpu: 0.0.40
codegen_flags: <defaults>
</compile_context>

<pallas_src>
import jax
import jax.numpy as jnp
from jax import lax
from jax.experimental import pallas as pl
from jax.experimental.pallas import tpu as pltpu


# ----------------------------------------------------------------------------
# Model config
# ----------------------------------------------------------------------------
VOCAB = 50
SEQ = 33          # so the final conv length is 31 (matches view(-1, 128*31))
HIDDEN = 32
C1 = 32           # features_conv1 out channels
C_TGT = 64        # target_conv out channels
C_REM = 128       # remain_conv out channels (PyTorch code hardcodes 128)
L_FINAL = 31      # PyTorch code hardcodes 31  (== SEQ - 2)
NUM_CLASSES = 4
BB_MAX = 8        # max batch elements per grid step


# ----------------------------------------------------------------------------
# Fused forward kernel: one grid step == one batch BLOCK of BB elements
# ----------------------------------------------------------------------------
def _gradcam_fused_kernel(tok_ref, msk_ref,                      # per-block inputs
                          emb_ref, bw_ref, bb_ref,               # bert stand-in
                          w1c_ref, b1_ref,                       # conv1 (fused taps)
                          w2c_ref, b2_ref,                       # target_conv
                          w3c_ref, b3_ref,                       # remain_conv
                          wcls_ref, sel_ref, clsb_ref,           # classifier
                          logits_ref, acts_ref,                  # outputs
                          hbuf_ref, pad1_ref, pad2_ref):         # VMEM scratch
    f32 = jnp.float32
    BB = tok_ref.shape[0]

    # ---- zero ONLY the boundary rows of the padded-conv scratches -----------
    # Rows 1..L_FINAL are overwritten for every batch element; rows 0 and SEQ-1
    # must stay zero.  Unconditional per step (megacore-safe), two tiny stores.
    pad1_ref[pl.ds(0, 1), :] = jnp.zeros((1, C1), f32)
    pad1_ref[pl.ds(L_FINAL + 1, 1), :] = jnp.zeros((1, C1), f32)
    pad2_ref[pl.ds(0, 1), :] = jnp.zeros((1, C_TGT), f32)
    pad2_ref[pl.ds(L_FINAL + 1, 1), :] = jnp.zeros((1, C_TGT), f32)

    # ---- embedding gather + mask + bert dense, STACKED over the block -------
    tok_col = jnp.concatenate([tok_ref[bi] for bi in range(BB)], axis=0)  # (BB*SEQ, 1) i32
    msk_col = jnp.concatenate([msk_ref[bi] for bi in range(BB)], axis=0)  # (BB*SEQ, 1) f32
    vocab_iota = lax.broadcasted_iota(jnp.int32, (BB * SEQ, VOCAB), 1)
    onehot = (tok_col == vocab_iota).astype(f32)                          # (BB*SEQ, VOCAB)
    emb = jnp.dot(onehot, emb_ref[...], preferred_element_type=f32) * msk_col
    h_all = jnp.tanh(jnp.dot(emb, bw_ref[...], preferred_element_type=f32)
                     + bb_ref[...])                                       # (BB*SEQ, HIDDEN)
    hbuf_ref[...] = h_all

    # ---- per-element convs + classifier (small static unrolled loop) --------
    for bi in range(BB):
        base = bi * SEQ

        # conv1: Conv2d(1, C1, kernel=(3, HIDDEN)), 'valid' over seq + ReLU.
        # Fused-tap form: one matmul with K = 3*HIDDEN.
        lhs1 = jnp.concatenate(
            [hbuf_ref[pl.ds(base + 0, L_FINAL), :],
             hbuf_ref[pl.ds(base + 1, L_FINAL), :],
             hbuf_ref[pl.ds(base + 2, L_FINAL), :]], axis=1)              # (L, 3*HIDDEN)
        a1 = jnp.maximum(
            jnp.dot(lhs1, w1c_ref[...], preferred_element_type=f32) + b1_ref[...],
            0.0)                                                          # (L, C1)

        # target_conv: Conv1d(C1 -> 64, k=3, pad=1) + ReLU (zero-padded scratch).
        pad1_ref[pl.ds(1, L_FINAL), :] = a1
        lhs2 = jnp.concatenate(
            [pad1_ref[pl.ds(0, L_FINAL), :], a1,
             pad1_ref[pl.ds(2, L_FINAL), :]], axis=1)                     # (L, 3*C1)
        a2 = jnp.maximum(
            jnp.dot(lhs2, w2c_ref[...], preferred_element_type=f32) + b2_ref[...],
            0.0)                                                          # (L, C_TGT)
        acts_ref[bi] = a2     # target-layer activations (== PyTorch get_activations)

        # remain_conv: Conv1d(64 -> 128, k=3, pad=1) + ReLU.
        pad2_ref[pl.ds(1, L_FINAL), :] = a2
        lhs3 = jnp.concatenate(
            [pad2_ref[pl.ds(0, L_FINAL), :], a2,
             pad2_ref[pl.ds(2, L_FINAL), :]], axis=1)                     # (L, 3*C_TGT)
        a3 = jnp.maximum(
            jnp.dot(lhs3, w3c_ref[...], preferred_element_type=f32) + b3_ref[...],
            0.0)                                                          # (L, C_REM)

        # classifier: per-class sublane-reduce partials -> lane concat -> one MXU
        # dot with the precomputed block-selection matrix (no full 2-axis reduces,
        # no scalar scatter).  wcls is pre-permuted (N, L, C) == channel-major
        # view(-1, 128*31) layout.
        parts = [jnp.sum(a3 * wcls_ref[n], axis=0, keepdims=True)         # (1, C_REM)
                 for n in range(NUM_CLASSES)]
        cls_row = jnp.concatenate(parts, axis=1)                          # (1, N*C_REM)
        row = (jnp.dot(cls_row, sel_ref[...], preferred_element_type=f32)
               + clsb_ref[...])                                           # (1, N)
        logits_ref[bi] = row


def gradcam_apply(params, x_tokens, masks):
    """Fused forward. Returns (logits (B, NUM_CLASSES), activations (B, L_FINAL, C_TGT))."""
    B, S = x_tokens.shape
    assert S == SEQ, (S, SEQ)

    # Batch-block size: amortize per-grid-step overhead, but keep the grid >= 2
    # steps so v7x's second TensorCore stays busy ("parallel" axis is core-sharded).
    BB = max(1, min(BB_MAX, pl.cdiv(B, 2)))
    G = pl.cdiv(B, BB)
    Bp = G * BB

    tok = x_tokens.astype(jnp.int32)
    msk = masks.astype(jnp.float32)
    if Bp != B:                                    # pad batch with masked-out rows
        tok = jnp.concatenate([tok, jnp.zeros((Bp - B, S), jnp.int32)], axis=0)
        msk = jnp.concatenate([msk, jnp.zeros((Bp - B, S), jnp.float32)], axis=0)
    tok3 = tok.reshape(Bp, S, 1)
    msk3 = msk.reshape(Bp, S, 1)

    kernel_inputs = (tok3, msk3,
                     params["emb"], params["bert_w"], params["bert_b"],
                     params["w1c"], params["b1"],
                     params["w2c"], params["b2"],
                     params["w3c"], params["b3"],
                     params["wcls"], params["cls_sel"], params["cls_b"])

    # Advisory cost estimate for XLA scheduling around the custom call.
    flops_per_b = 2 * (SEQ * VOCAB * HIDDEN
                       + SEQ * HIDDEN * HIDDEN
                       + L_FINAL * 3 * HIDDEN * C1
                       + L_FINAL * 3 * C1 * C_TGT
                       + L_FINAL * 3 * C_TGT * C_REM
                       + L_FINAL * C_REM * NUM_CLASSES)
    bytes_accessed = sum(int(a.size) * a.dtype.itemsize for a in kernel_inputs)
    bytes_accessed += Bp * NUM_CLASSES * 4 + Bp * L_FINAL * C_TGT * 4

    logits3, acts = pl.pallas_call(
        _gradcam_fused_kernel,
        out_shape=(jax.ShapeDtypeStruct((Bp, 1, NUM_CLASSES), jnp.float32),
                   jax.ShapeDtypeStruct((Bp, L_FINAL, C_TGT), jnp.float32)),
        grid=(G,),
        in_specs=[
            pl.BlockSpec((BB, SEQ, 1), lambda b: (b, 0, 0)),                 # tokens
            pl.BlockSpec((BB, SEQ, 1), lambda b: (b, 0, 0)),                 # masks
            pl.BlockSpec((VOCAB, HIDDEN), lambda b: (0, 0)),                 # emb table
            pl.BlockSpec((HIDDEN, HIDDEN), lambda b: (0, 0)),                # bert_w
            pl.BlockSpec((1, HIDDEN), lambda b: (0, 0)),                     # bert_b
            pl.BlockSpec((3 * HIDDEN, C1), lambda b: (0, 0)),                # w1 (fused taps)
            pl.BlockSpec((1, C1), lambda b: (0, 0)),                         # b1
            pl.BlockSpec((3 * C1, C_TGT), lambda b: (0, 0)),                 # w2
            pl.BlockSpec((1, C_TGT), lambda b: (0, 0)),                      # b2
            pl.BlockSpec((3 * C_TGT, C_REM), lambda b: (0, 0)),              # w3
            pl.BlockSpec((1, C_REM), lambda b: (0, 0)),                      # b3
            pl.BlockSpec((NUM_CLASSES, L_FINAL, C_REM), lambda b: (0, 0, 0)),  # wcls
            pl.BlockSpec((NUM_CLASSES * C_REM, NUM_CLASSES), lambda b: (0, 0)),  # sel
            pl.BlockSpec((1, NUM_CLASSES), lambda b: (0, 0)),                # cls_b
        ],
        out_specs=(pl.BlockSpec((BB, 1, NUM_CLASSES), lambda b: (b, 0, 0)),
                   pl.BlockSpec((BB, L_FINAL, C_TGT), lambda b: (b, 0, 0))),
        scratch_shapes=[pltpu.VMEM((BB * SEQ, HIDDEN), jnp.float32),   # bert output
                        pltpu.VMEM((SEQ, C1), jnp.float32),            # padded conv in 1
                        pltpu.VMEM((SEQ, C_TGT), jnp.float32)],        # padded conv in 2
        compiler_params=pltpu.CompilerParams(
            dimension_semantics=("parallel",)),                        # 2 TCs on v7x
        cost_estimate=pl.CostEstimate(flops=Bp * flops_per_b,
                                      transcendentals=Bp * SEQ * HIDDEN,
                                      bytes_accessed=bytes_accessed),
    )(*kernel_inputs)

    logits = logits3.reshape(Bp, NUM_CLASSES)[:B]
    return logits, acts[:B]


_gradcam_apply_jit = jax.jit(gradcam_apply)


def gradcam_forward(params, x_tokens, masks):
    return _gradcam_apply_jit(params, x_tokens, masks)[0]


def get_activations(params, x_tokens, masks):
    # PyTorch's target_conv output is NCL (B, 64, 31); kernel keeps channels-last.
    acts = _gradcam_apply_jit(params, x_tokens, masks)[1]
    return jnp.transpose(acts, (0, 2, 1))


# ----------------------------------------------------------------------------
# Deterministic parameters — all layout prep hoisted to init (kernel-ready)
# ----------------------------------------------------------------------------
def init_params(key):
    ks = jax.random.split(key, 11)
    s = 0.05
    emb = jax.random.normal(ks[0], (VOCAB, HIDDEN), jnp.float32) * s
    bert_w = jax.random.normal(ks[1], (HIDDEN, HIDDEN), jnp.float32) * s
    bert_b = jax.random.normal(ks[2], (HIDDEN,), jnp.float32) * s
    conv1_w = jax.random.normal(ks[3], (C1, 1, 3, HIDDEN), jnp.float32) * s   # (Cout,Cin,kH,kW)
    conv1_b = jax.random.normal(ks[4], (C1,), jnp.float32) * s
    tgt_w = jax.random.normal(ks[5], (C_TGT, C1, 3), jnp.float32) * s         # (Cout,Cin,k)
    tgt_b = jax.random.normal(ks[6], (C_TGT,), jnp.float32) * s
    rem_w = jax.random.normal(ks[7], (C_REM, C_TGT, 3), jnp.float32) * s
    rem_b = jax.random.normal(ks[8], (C_REM,), jnp.float32) * s
    cls_w = jax.random.normal(ks[9], (NUM_CLASSES, C_REM * L_FINAL), jnp.float32) * s
    cls_b = jax.random.normal(ks[10], (NUM_CLASSES,), jnp.float32) * s

    # Conv weights as fused-tap slabs (3*C_in, C_out): row k*C_in + i <-> (tap k, in i).
    w1 = jnp.transpose(conv1_w[:, 0], (1, 2, 0))            # (3, HIDDEN, C1)
    w2 = jnp.transpose(tgt_w, (2, 1, 0))                    # (3, C1, C_TGT)
    w3 = jnp.transpose(rem_w, (2, 1, 0))                    # (3, C_TGT, C_REM)

    # Classifier weight pre-permuted to (N, L, C): wcls[n, l, c] = cls_w[n, c*L + l]
    # (channel-major flatten, matching PyTorch's view(-1, 128*31)).
    wcls = jnp.transpose(cls_w.reshape(NUM_CLASSES, C_REM, L_FINAL), (0, 2, 1))

    # Block-selection matrix for the classifier epilogue: sel[n*C + c, m] = (n == m).
    sel = (jnp.arange(NUM_CLASSES * C_REM)[:, None] // C_REM
           == jnp.arange(NUM_CLASSES)[None, :]).astype(jnp.float32)

    params = {
        "emb": emb,
        "bert_w": bert_w,
        "bert_b": bert_b.reshape(1, HIDDEN),
        "w1c": w1.reshape(3 * HIDDEN, C1),
        "b1": conv1_b.reshape(1, C1),
        "w2c": w2.reshape(3 * C1, C_TGT),
        "b2": tgt_b.reshape(1, C_TGT),
        "w3c": w3.reshape(3 * C_TGT, C_REM),
        "b3": rem_b.reshape(1, C_REM),
        "wcls": wcls,
        "cls_sel": sel,
        "cls_b": cls_b.reshape(1, NUM_CLASSES),
    }
    return jax.tree_util.tree_map(lambda a: a.astype(jnp.float32), params)


# ----------------------------------------------------------------------------
# Pure-JAX reference (same math, no Pallas) for a correctness check
# ----------------------------------------------------------------------------
def _reference_forward(params, x_tokens, masks):
    w1 = params["w1c"].reshape(3, HIDDEN, C1)
    w2 = params["w2c"].reshape(3, C1, C_TGT)
    w3 = params["w3c"].reshape(3, C_TGT, C_REM)

    emb = jnp.take(params["emb"], x_tokens, axis=0) * masks[..., None]
    h = jnp.tanh(jnp.einsum("bsh,hd->bsd", emb, params["bert_w"]) + params["bert_b"][0])

    def conv3(x, w, b, pad):
        if pad:
            x = jnp.pad(x, ((0, 0), (1, 1), (0, 0)))
        L = x.shape[1] - 2
        y = sum(jnp.einsum("bsi,io->bso", x[:, k:k + L], w[k]) for k in range(3))
        return jax.nn.relu(y + b[0])

    a1 = conv3(h, w1, params["b1"], pad=False)            # (B, 31, C1)
    a2 = conv3(a1, w2, params["b2"], pad=True)            # (B, 31, 64)
    a3 = conv3(a2, w3, params["b3"], pad=True)            # (B, 31, 128)
    logits = jnp.einsum("blc,nlc->bn", a3, params["wcls"]) + params["cls_b"][0]
    return logits, jnp.transpose(a2, (0, 2, 1))


# ----------------------------------------------------------------------------
if __name__ == "__main__":
    key = jax.random.PRNGKey(0)
    kp, kx1, kx2 = jax.random.split(key, 3)

    params = init_params(kp)

    def make_inputs(k, B):
        x_tokens = jax.random.randint(k, (B, SEQ), 0, VOCAB, dtype=jnp.int32)
        masks = jnp.concatenate(
            [jnp.ones((B, SEQ - 4), jnp.float32), jnp.zeros((B, 4), jnp.float32)],
            axis=1)
        return x_tokens, masks

    def check(x_tokens, masks):
        B = x_tokens.shape[0]
        logits = jax.block_until_ready(gradcam_forward(params, x_tokens, masks))
        acts = jax.block_until_ready(get_activations(params, x_tokens, masks))
        assert logits.shape == (B, NUM_CLASSES), logits.shape
        assert acts.shape == (B, C_TGT, L_FINAL), acts.shape
        assert bool(jnp.all(jnp.isfinite(logits)))
        ref_logits, ref_acts = _reference_forward(params, x_tokens, masks)
        assert bool(jnp.allclose(logits, ref_logits, atol=2e-3, rtol=2e-3)), (
            float(jnp.max(jnp.abs(logits - ref_logits))))
        assert bool(jnp.allclose(acts, ref_acts, atol=2e-3, rtol=2e-3)), (
            float(jnp.max(jnp.abs(acts - ref_acts))))

    # Small batch (BB=1, grid=2) and larger batch (BB=8, grid=2) — exercises both
    # the single-element and batch-blocked paths.
    check(*make_inputs(kx1, 2))
    check(*make_inputs(kx2, 16))

    print("KERNEL_OK")
</pallas_src>

<mosaic_0001>
module attributes {stable_mosaic.version = 11 : i64} {
  func.func @_gradcam_fused_kernel(%arg0: i32, %arg1: memref<1x33x1xi32, #tpu.memory_space<vmem>>, %arg2: memref<1x33x1xf32, #tpu.memory_space<vmem>>, %arg3: memref<50x32xf32, #tpu.memory_space<vmem>>, %arg4: memref<32x32xf32, #tpu.memory_space<vmem>>, %arg5: memref<1x32xf32, #tpu.memory_space<vmem>>, %arg6: memref<96x32xf32, #tpu.memory_space<vmem>>, %arg7: memref<1x32xf32, #tpu.memory_space<vmem>>, %arg8: memref<96x64xf32, #tpu.memory_space<vmem>>, %arg9: memref<1x64xf32, #tpu.memory_space<vmem>>, %arg10: memref<192x128xf32, #tpu.memory_space<vmem>>, %arg11: memref<1x128xf32, #tpu.memory_space<vmem>>, %arg12: memref<4x31x128xf32, #tpu.memory_space<vmem>>, %arg13: memref<512x4xf32, #tpu.memory_space<vmem>>, %arg14: memref<1x4xf32, #tpu.memory_space<vmem>>, %arg15: memref<1x1x4xf32, #tpu.memory_space<vmem>>, %arg16: memref<1x31x64xf32, #tpu.memory_space<vmem>>, %arg17: memref<33x32xf32, #tpu.memory_space<vmem>>, %arg18: memref<33x32xf32, #tpu.memory_space<vmem>>, %arg19: memref<33x64xf32, #tpu.memory_space<vmem>>) attributes {dimension_semantics = [#tpu.dimension_semantics<parallel>], iteration_bounds = array<i64: 2>, scalar_prefetch = 0 : i64, scratch_operands = 3 : i64, tpu.core_type = #tpu.core_type<tc>, window_params = [{transform_indices = @transform_0, window_bounds = array<i64: 1, 33, 1>}, {transform_indices = @transform_1, window_bounds = array<i64: 1, 33, 1>}, {pipeline_mode = #tpu.pipeline_mode<synchronous>, transform_indices = @transform_2, window_bounds = array<i64: 50, 32>}, {pipeline_mode = #tpu.pipeline_mode<synchronous>, transform_indices = @transform_3, window_bounds = array<i64: 32, 32>}, {pipeline_mode = #tpu.pipeline_mode<synchronous>, transform_indices = @transform_4, window_bounds = array<i64: 1, 32>}, {pipeline_mode = #tpu.pipeline_mode<synchronous>, transform_indices = @transform_5, window_bounds = array<i64: 96, 32>}, {pipeline_mode = #tpu.pipeline_mode<synchronous>, transform_indices = @transform_6, window_bounds = array<i64: 1, 32>}, {pipeline_mode = #tpu.pipeline_mode<synchronous>, transform_indices = @transform_7, window_bounds = array<i64: 96, 64>}, {pipeline_mode = #tpu.pipeline_mode<synchronous>, transform_indices = @transform_8, window_bounds = array<i64: 1, 64>}, {pipeline_mode = #tpu.pipeline_mode<synchronous>, transform_indices = @transform_9, window_bounds = array<i64: 192, 128>}, {pipeline_mode = #tpu.pipeline_mode<synchronous>, transform_indices = @transform_10, window_bounds = array<i64: 1, 128>}, {pipeline_mode = #tpu.pipeline_mode<synchronous>, transform_indices = @transform_11, window_bounds = array<i64: 4, 31, 128>}, {pipeline_mode = #tpu.pipeline_mode<synchronous>, transform_indices = @transform_12, window_bounds = array<i64: 512, 4>}, {pipeline_mode = #tpu.pipeline_mode<synchronous>, transform_indices = @transform_13, window_bounds = array<i64: 1, 4>}, {transform_indices = @transform_14, window_bounds = array<i64: 1, 1, 4>}, {transform_indices = @transform_15, window_bounds = array<i64: 1, 31, 64>}]} {
    %cst = arith.constant 0.000000e+00 : f32
    %0 = vector.broadcast %cst : f32 to vector<1x32xf32>
    %c0 = arith.constant 0 : index
    %c0_0 = arith.constant 0 : index
    %1 = vector.load %arg18[%c0, %c0_0] : memref<33x32xf32, #tpu.memory_space<vmem>>, vector<1x32xf32>
    tpu.vector_store %arg18[%c0, %c0_0], %0 {strides = array<i32>} : memref<33x32xf32, #tpu.memory_space<vmem>>, vector<1x32xf32>,
    %cst_1 = arith.constant 0.000000e+00 : f32
    %2 = vector.broadcast %cst_1 : f32 to vector<1x32xf32>
    %c32 = arith.constant 32 : index
    %c0_2 = arith.constant 0 : index
    %3 = vector.load %arg18[%c32, %c0_2] : memref<33x32xf32, #tpu.memory_space<vmem>>, vector<1x32xf32>
    tpu.vector_store %arg18[%c32, %c0_2], %2 {strides = array<i32>} : memref<33x32xf32, #tpu.memory_space<vmem>>, vector<1x32xf32>,
    %cst_3 = arith.constant 0.000000e+00 : f32
    %4 = vector.broadcast %cst_3 : f32 to vector<1x64xf32>
    %c0_4 = arith.constant 0 : index
    %c0_5 = arith.constant 0 : index
    %5 = vector.load %arg19[%c0_4, %c0_5] : memref<33x64xf32, #tpu.memory_space<vmem>>, vector<1x64xf32>
    tpu.vector_store %arg19[%c0_4, %c0_5], %4 {strides = array<i32>} : memref<33x64xf32, #tpu.memory_space<vmem>>, vector<1x64xf32>,
    %cst_6 = arith.constant 0.000000e+00 : f32
    %6 = vector.broadcast %cst_6 : f32 to vector<1x64xf32>
    %c32_7 = arith.constant 32 : index
    %c0_8 = arith.constant 0 : index
    %7 = vector.load %arg19[%c32_7, %c0_8] : memref<33x64xf32, #tpu.memory_space<vmem>>, vector<1x64xf32>
    tpu.vector_store %arg19[%c32_7, %c0_8], %6 {strides = array<i32>} : memref<33x64xf32, #tpu.memory_space<vmem>>, vector<1x64xf32>,
    %c0_9 = arith.constant 0 : index
    %c0_10 = arith.constant 0 : index
    %c0_11 = arith.constant 0 : index
    %8 = vector.load %arg1[%c0_9, %c0_10, %c0_11] : memref<1x33x1xi32, #tpu.memory_space<vmem>>, vector<1x33x1xi32>
    %9 = vector.shape_cast %8 : vector<1x33x1xi32> to vector<33x1xi32>
    %c0_12 = arith.constant 0 : index
    %c0_13 = arith.constant 0 : index
    %c0_14 = arith.constant 0 : index
    %10 = vector.load %arg2[%c0_12, %c0_13, %c0_14] : memref<1x33x1xf32, #tpu.memory_space<vmem>>, vector<1x33x1xf32>
    %11 = vector.shape_cast %10 : vector<1x33x1xf32> to vector<33x1xf32>
    %12 = tpu.iota {dimensions = array<i32: 1>} : vector<33x50xi32>
    %13 = vector.broadcast %9 : vector<33x1xi32> to vector<33x50xi32>
    %14 = arith.cmpi eq, %13, %12 : vector<33x50xi32>
    %15 = arith.extui %14 : vector<33x50xi1> to vector<33x50xi32>
    %16 = arith.sitofp %15 : vector<33x50xi32> to vector<33x50xf32>
    %c0_15 = arith.constant 0 : index
    %c0_16 = arith.constant 0 : index
    %17 = vector.load %arg3[%c0_15, %c0_16] : memref<50x32xf32, #tpu.memory_space<vmem>>, vector<50x32xf32>
    %cst_17 = arith.constant dense<0.000000e+00> : vector<33x32xf32>
    %18 = tpu.matmul %16, %17, %cst_17 {dimension_numbers = #tpu.dot_dimension_numbers<[1], [0], [0], [1], [0, 0, 1, 1], [], []>} : vector<33x50xf32>, vector<50x32xf32>, vector<33x32xf32> -> vector<33x32xf32>
    %19 = vector.broadcast %11 : vector<33x1xf32> to vector<33x32xf32>
    %20 = arith.mulf %18, %19 : vector<33x32xf32>
    %c0_18 = arith.constant 0 : index
    %c0_19 = arith.constant 0 : index
    %21 = vector.load %arg4[%c0_18, %c0_19] : memref<32x32xf32, #tpu.memory_space<vmem>>, vector<32x32xf32>
    %cst_20 = arith.constant dense<0.000000e+00> : vector<33x32xf32>
    %22 = tpu.matmul %20, %21, %cst_20 {dimension_numbers = #tpu.dot_dimension_numbers<[1], [0], [0], [1], [0, 0, 1, 1], [], []>} : vector<33x32xf32>, vector<32x32xf32>, vector<33x32xf32> -> vector<33x32xf32>
    %c0_21 = arith.constant 0 : index
    %c0_22 = arith.constant 0 : index
    %23 = vector.load %arg5[%c0_21, %c0_22] : memref<1x32xf32, #tpu.memory_space<vmem>>, vector<1x32xf32>
    %24 = vector.broadcast %23 : vector<1x32xf32> to vector<33x32xf32>
    %25 = arith.addf %22, %24 : vector<33x32xf32>
    %26 = math.tanh %25 : vector<33x32xf32>
    %c0_23 = arith.constant 0 : index
    %c0_24 = arith.constant 0 : index
    %27 = vector.load %arg17[%c0_23, %c0_24] : memref<33x32xf32, #tpu.memory_space<vmem>>, vector<33x32xf32>
    tpu.vector_store %arg17[%c0_23, %c0_24], %26 {strides = array<i32>} : memref<33x32xf32, #tpu.memory_space<vmem>>, vector<33x32xf32>,
    %c0_25 = arith.constant 0 : index
    %c0_26 = arith.constant 0 : index
    %28 = vector.load %arg17[%c0_25, %c0_26] : memref<33x32xf32, #tpu.memory_space<vmem>>, vector<31x32xf32>
    %c1 = arith.constant 1 : index
    %c0_27 = arith.constant 0 : index
    %29 = vector.load %arg17[%c1, %c0_27] : memref<33x32xf32, #tpu.memory_space<vmem>>, vector<31x32xf32>
    %c2 = arith.constant 2 : index
    %c0_28 = arith.constant 0 : index
    %30 = vector.load %arg17[%c2, %c0_28] : memref<33x32xf32, #tpu.memory_space<vmem>>, vector<31x32xf32>
    %31 = tpu.concatenate %28, %29, %30 in 1 : vector<31x32xf32>, vector<31x32xf32>, vector<31x32xf32> -> vector<31x96xf32>
    %c0_29 = arith.constant 0 : index
    %c0_30 = arith.constant 0 : index
    %32 = vector.load %arg6[%c0_29, %c0_30] : memref<96x32xf32, #tpu.memory_space<vmem>>, vector<96x32xf32>
    %cst_31 = arith.constant dense<0.000000e+00> : vector<31x32xf32>
    %33 = tpu.matmul %31, %32, %cst_31 {dimension_numbers = #tpu.dot_dimension_numbers<[1], [0], [0], [1], [0, 0, 1, 1], [], []>} : vector<31x96xf32>, vector<96x32xf32>, vector<31x32xf32> -> vector<31x32xf32>
    %c0_32 = arith.constant 0 : index
    %c0_33 = arith.constant 0 : index
    %34 = vector.load %arg7[%c0_32, %c0_33] : memref<1x32xf32, #tpu.memory_space<vmem>>, vector<1x32xf32>
    %35 = vector.broadcast %34 : vector<1x32xf32> to vector<31x32xf32>
    %36 = arith.addf %33, %35 : vector<31x32xf32>
    %cst_34 = arith.constant 0.000000e+00 : f32
    %37 = vector.broadcast %cst_34 : f32 to vector<31x32xf32>
    %38 = arith.maximumf %36, %37 : vector<31x32xf32>
    %c1_35 = arith.constant 1 : index
    %c0_36 = arith.constant 0 : index
    %39 = vector.load %arg18[%c1_35, %c0_36] : memref<33x32xf32, #tpu.memory_space<vmem>>, vector<31x32xf32>
    tpu.vector_store %arg18[%c1_35, %c0_36], %38 {strides = array<i32>} : memref<33x32xf32, #tpu.memory_space<vmem>>, vector<31x32xf32>,
    %c0_37 = arith.constant 0 : index
    %c0_38 = arith.constant 0 : index
    %40 = vector.load %arg18[%c0_37, %c0_38] : memref<33x32xf32, #tpu.memory_space<vmem>>, vector<31x32xf32>
    %c2_39 = arith.constant 2 : index
    %c0_40 = arith.constant 0 : index
    %41 = vector.load %arg18[%c2_39, %c0_40] : memref<33x32xf32, #tpu.memory_space<vmem>>, vector<31x32xf32>
    %42 = tpu.concatenate %40, %38, %41 in 1 : vector<31x32xf32>, vector<31x32xf32>, vector<31x32xf32> -> vector<31x96xf32>
    %c0_41 = arith.constant 0 : index
    %c0_42 = arith.constant 0 : index
    %43 = vector.load %arg8[%c0_41, %c0_42] : memref<96x64xf32, #tpu.memory_space<vmem>>, vector<96x64xf32>
    %cst_43 = arith.constant dense<0.000000e+00> : vector<31x64xf32>
    %44 = tpu.matmul %42, %43, %cst_43 {dimension_numbers = #tpu.dot_dimension_numbers<[1], [0], [0], [1], [0, 0, 1, 1], [], []>} : vector<31x96xf32>, vector<96x64xf32>, vector<31x64xf32> -> vector<31x64xf32>
    %c0_44 = arith.constant 0 : index
    %c0_45 = arith.constant 0 : index
    %45 = vector.load %arg9[%c0_44, %c0_45] : memref<1x64xf32, #tpu.memory_space<vmem>>, vector<1x64xf32>
    %46 = vector.broadcast %45 : vector<1x64xf32> to vector<31x64xf32>
    %47 = arith.addf %44, %46 : vector<31x64xf32>
    %cst_46 = arith.constant 0.000000e+00 : f32
    %48 = vector.broadcast %cst_46 : f32 to vector<31x64xf32>
    %49 = arith.maximumf %47, %48 : vector<31x64xf32>
    %c0_47 = arith.constant 0 : index
    %c0_48 = arith.constant 0 : index
    %c0_49 = arith.constant 0 : index
    %50 = vector.load %arg16[%c0_47, %c0_48, %c0_49] : memref<1x31x64xf32, #tpu.memory_space<vmem>>, vector<1x31x64xf32>
    %51 = vector.shape_cast %50 : vector<1x31x64xf32> to vector<31x64xf32>
    %52 = vector.shape_cast %49 : vector<31x64xf32> to vector<1x31x64xf32>
    tpu.vector_store %arg16[%c0_47, %c0_48, %c0_49], %52 {strides = array<i32>} : memref<1x31x64xf32, #tpu.memory_space<vmem>>, vector<1x31x64xf32>,
    %c1_50 = arith.constant 1 : index
    %c0_51 = arith.constant 0 : index
    %53 = vector.load %arg19[%c1_50, %c0_51] : memref<33x64xf32, #tpu.memory_space<vmem>>, vector<31x64xf32>
    tpu.vector_store %arg19[%c1_50, %c0_51], %49 {strides = array<i32>} : memref<33x64xf32, #tpu.memory_space<vmem>>, vector<31x64xf32>,
    %c0_52 = arith.constant 0 : index
    %c0_53 = arith.constant 0 : index
    %54 = vector.load %arg19[%c0_52, %c0_53] : memref<33x64xf32, #tpu.memory_space<vmem>>, vector<31x64xf32>
    %c2_54 = arith.constant 2 : index
    %c0_55 = arith.constant 0 : index
    %55 = vector.load %arg19[%c2_54, %c0_55] : memref<33x64xf32, #tpu.memory_space<vmem>>, vector<31x64xf32>
    %56 = tpu.concatenate %54, %49, %55 in 1 : vector<31x64xf32>, vector<31x64xf32>, vector<31x64xf32> -> vector<31x192xf32>
    %c0_56 = arith.constant 0 : index
    %c0_57 = arith.constant 0 : index
    %57 = vector.load %arg10[%c0_56, %c0_57] : memref<192x128xf32, #tpu.memory_space<vmem>>, vector<192x128xf32>
    %cst_58 = arith.constant dense<0.000000e+00> : vector<31x128xf32>
    %58 = tpu.matmul %56, %57, %cst_58 {dimension_numbers = #tpu.dot_dimension_numbers<[1], [0], [0], [1], [0, 0, 1, 1], [], []>} : vector<31x192xf32>, vector<192x128xf32>, vector<31x128xf32> -> vector<31x128xf32>
    %c0_59 = arith.constant 0 : index
    %c0_60 = arith.constant 0 : index
    %59 = vector.load %arg11[%c0_59, %c0_60] : memref<1x128xf32, #tpu.memory_space<vmem>>, vector<1x128xf32>
    %60 = vector.broadcast %59 : vector<1x128xf32> to vector<31x128xf32>
    %61 = arith.addf %58, %60 : vector<31x128xf32>
    %cst_61 = arith.constant 0.000000e+00 : f32
    %62 = vector.broadcast %cst_61 : f32 to vector<31x128xf32>
    %63 = arith.maximumf %61, %62 : vector<31x128xf32>
    %c0_62 = arith.constant 0 : index
    %c0_63 = arith.constant 0 : index
    %c0_64 = arith.constant 0 : index
    %64 = vector.load %arg12[%c0_62, %c0_63, %c0_64] : memref<4x31x128xf32, #tpu.memory_space<vmem>>, vector<1x31x128xf32>
    %65 = vector.shape_cast %64 : vector<1x31x128xf32> to vector<31x128xf32>
    %66 = arith.mulf %63, %65 : vector<31x128xf32>
    %cst_65 = arith.constant dense<0.000000e+00> : vector<128xf32>
    %67 = vector.multi_reduction <add>, %66, %cst_65 [0] : vector<31x128xf32> to vector<128xf32>
    %68 = vector.shape_cast %67 : vector<128xf32> to vector<1x128xf32>
    %c1_66 = arith.constant 1 : index
    %c0_67 = arith.constant 0 : index
    %c0_68 = arith.constant 0 : index
    %69 = vector.load %arg12[%c1_66, %c0_67, %c0_68] : memref<4x31x128xf32, #tpu.memory_space<vmem>>, vector<1x31x128xf32>
    %70 = vector.shape_cast %69 : vector<1x31x128xf32> to vector<31x128xf32>
    %71 = arith.mulf %63, %70 : vector<31x128xf32>
    %cst_69 = arith.constant dense<0.000000e+00> : vector<128xf32>
    %72 = vector.multi_reduction <add>, %71, %cst_69 [0] : vector<31x128xf32> to vector<128xf32>
    %73 = vector.shape_cast %72 : vector<128xf32> to vector<1x128xf32>
    %c2_70 = arith.constant 2 : index
    %c0_71 = arith.constant 0 : index
    %c0_72 = arith.constant 0 : index
    %74 = vector.load %arg12[%c2_70, %c0_71, %c0_72] : memref<4x31x128xf32, #tpu.memory_space<vmem>>, vector<1x31x128xf32>
    %75 = vector.shape_cast %74 : vector<1x31x128xf32> to vector<31x128xf32>
    %76 = arith.mulf %63, %75 : vector<31x128xf32>
    %cst_73 = arith.constant dense<0.000000e+00> : vector<128xf32>
    %77 = vector.multi_reduction <add>, %76, %cst_73 [0] : vector<31x128xf32> to vector<128xf32>
    %78 = vector.shape_cast %77 : vector<128xf32> to vector<1x128xf32>
    %c3 = arith.constant 3 : index
    %c0_74 = arith.constant 0 : index
    %c0_75 = arith.constant 0 : index
    %79 = vector.load %arg12[%c3, %c0_74, %c0_75] : memref<4x31x128xf32, #tpu.memory_space<vmem>>, vector<1x31x128xf32>
    %80 = vector.shape_cast %79 : vector<1x31x128xf32> to vector<31x128xf32>
    %81 = arith.mulf %63, %80 : vector<31x128xf32>
    %cst_76 = arith.constant dense<0.000000e+00> : vector<128xf32>
    %82 = vector.multi_reduction <add>, %81, %cst_76 [0] : vector<31x128xf32> to vector<128xf32>
    %83 = vector.shape_cast %82 : vector<128xf32> to vector<1x128xf32>
    %84 = tpu.concatenate %68, %73, %78, %83 in 1 : vector<1x128xf32>, vector<1x128xf32>, vector<1x128xf32>, vector<1x128xf32> -> vector<1x512xf32>
    %c0_77 = arith.constant 0 : index
    %c0_78 = arith.constant 0 : index
    %85 = vector.load %arg13[%c0_77, %c0_78] : memref<512x4xf32, #tpu.memory_space<vmem>>, vector<512x4xf32>
    %cst_79 = arith.constant dense<0.000000e+00> : vector<1x4xf32>
    %86 = tpu.matmul %84, %85, %cst_79 {dimension_numbers = #tpu.dot_dimension_numbers<[1], [0], [0], [1], [0, 0, 1, 1], [], []>} : vector<1x512xf32>, vector<512x4xf32>, vector<1x4xf32> -> vector<1x4xf32>
    %c0_80 = arith.constant 0 : index
    %c0_81 = arith.constant 0 : index
    %87 = vector.load %arg14[%c0_80, %c0_81] : memref<1x4xf32, #tpu.memory_space<vmem>>, vector<1x4xf32>
    %88 = arith.addf %86, %87 : vector<1x4xf32>
    %c0_82 = arith.constant 0 : index
    %c0_83 = arith.constant 0 : index
    %c0_84 = arith.constant 0 : index
    %89 = vector.load %arg15[%c0_82, %c0_83, %c0_84] : memref<1x1x4xf32, #tpu.memory_space<vmem>>, vector<1x1x4xf32>
    %90 = vector.shape_cast %89 : vector<1x1x4xf32> to vector<1x4xf32>
    %91 = vector.shape_cast %88 : vector<1x4xf32> to vector<1x1x4xf32>
    tpu.vector_store %arg15[%c0_82, %c0_83, %c0_84], %91 {strides = array<i32>} : memref<1x1x4xf32, #tpu.memory_space<vmem>>, vector<1x1x4xf32>,
    return
  }
  func.func @transform_0(%arg0: i32) -> (i32, i32, i32) {
    %c0_i32 = arith.constant 0 : i32
    %c0_i32_0 = arith.constant 0 : i32
    %c0_i32_1 = arith.constant 0 : i32
    return %arg0, %c0_i32, %c0_i32_0 : i32, i32, i32
  }
  func.func @transform_1(%arg0: i32) -> (i32, i32, i32) {
    %c0_i32 = arith.constant 0 : i32
    %c0_i32_0 = arith.constant 0 : i32
    %c0_i32_1 = arith.constant 0 : i32
    return %arg0, %c0_i32, %c0_i32_0 : i32, i32, i32
  }
  func.func @transform_2(%arg0: i32) -> (i32, i32) {
    %c0_i32 = arith.constant 0 : i32
    %c0_i32_0 = arith.constant 0 : i32
    %c0_i32_1 = arith.constant 0 : i32
    return %c0_i32, %c0_i32_0 : i32, i32
  }
  func.func @transform_3(%arg0: i32) -> (i32, i32) {
    %c0_i32 = arith.constant 0 : i32
    %c0_i32_0 = arith.constant 0 : i32
    %c0_i32_1 = arith.constant 0 : i32
    return %c0_i32, %c0_i32_0 : i32, i32
  }
  func.func @transform_4(%arg0: i32) -> (i32, i32) {
    %c0_i32 = arith.constant 0 : i32
    %c0_i32_0 = arith.constant 0 : i32
    %c0_i32_1 = arith.constant 0 : i32
    return %c0_i32, %c0_i32_0 : i32, i32
  }
  func.func @transform_5(%arg0: i32) -> (i32, i32) {
    %c0_i32 = arith.constant 0 : i32
    %c0_i32_0 = arith.constant 0 : i32
    %c0_i32_1 = arith.constant 0 : i32
    return %c0_i32, %c0_i32_0 : i32, i32
  }
  func.func @transform_6(%arg0: i32) -> (i32, i32) {
    %c0_i32 = arith.constant 0 : i32
    %c0_i32_0 = arith.constant 0 : i32
    %c0_i32_1 = arith.constant 0 : i32
    return %c0_i32, %c0_i32_0 : i32, i32
  }
  func.func @transform_7(%arg0: i32) -> (i32, i32) {
    %c0_i32 = arith.constant 0 : i32
    %c0_i32_0 = arith.constant 0 : i32
    %c0_i32_1 = arith.constant 0 : i32
    return %c0_i32, %c0_i32_0 : i32, i32
  }
  func.func @transform_8(%arg0: i32) -> (i32, i32) {
    %c0_i32 = arith.constant 0 : i32
    %c0_i32_0 = arith.constant 0 : i32
    %c0_i32_1 = arith.constant 0 : i32
    return %c0_i32, %c0_i32_0 : i32, i32
  }
  func.func @transform_9(%arg0: i32) -> (i32, i32) {
    %c0_i32 = arith.constant 0 : i32
    %c0_i32_0 = arith.constant 0 : i32
    %c0_i32_1 = arith.constant 0 : i32
    return %c0_i32, %c0_i32_0 : i32, i32
  }
  func.func @transform_10(%arg0: i32) -> (i32, i32) {
    %c0_i32 = arith.constant 0 : i32
    %c0_i32_0 = arith.constant 0 : i32
    %c0_i32_1 = arith.constant 0 : i32
    return %c0_i32, %c0_i32_0 : i32, i32
  }
  func.func @transform_11(%arg0: i32) -> (i32, i32, i32) {
    %c0_i32 = arith.constant 0 : i32
    %c0_i32_0 = arith.constant 0 : i32
    %c0_i32_1 = arith.constant 0 : i32
    %c0_i32_2 = arith.constant 0 : i32
    return %c0_i32, %c0_i32_0, %c0_i32_1 : i32, i32, i32
  }
  func.func @transform_12(%arg0: i32) -> (i32, i32) {
    %c0_i32 = arith.constant 0 : i32
    %c0_i32_0 = arith.constant 0 : i32
    %c0_i32_1 = arith.constant 0 : i32
    return %c0_i32, %c0_i32_0 : i32, i32
  }
  func.func @transform_13(%arg0: i32) -> (i32, i32) {
    %c0_i32 = arith.constant 0 : i32
    %c0_i32_0 = arith.constant 0 : i32
    %c0_i32_1 = arith.constant 0 : i32
    return %c0_i32, %c0_i32_0 : i32, i32
  }
  func.func @transform_14(%arg0: i32) -> (i32, i32, i32) {
    %c0_i32 = arith.constant 0 : i32
    %c0_i32_0 = arith.constant 0 : i32
    %c0_i32_1 = arith.constant 0 : i32
    return %arg0, %c0_i32, %c0_i32_0 : i32, i32, i32
  }
  func.func @transform_15(%arg0: i32) -> (i32, i32, i32) {
    %c0_i32 = arith.constant 0 : i32
    %c0_i32_0 = arith.constant 0 : i32
    %c0_i32_1 = arith.constant 0 : i32
    return %arg0, %c0_i32, %c0_i32_0 : i32, i32, i32
  }
}

</mosaic_0001>

<bundles_post_ra>
// kernel: gradcam_apply.1
= control target key start
LH: loop header
LB: loop body
LE: loop exit
PB: predicated region body
PF: predicated region fallthrough
CT: control target
= control target key end

     0   :  { %s3093_s0 = inlined_call_operand.vmem [shape: s32[2,33,1], index: 0, kind: input, shape index: {}]   ;;  %s3094_s1 = inlined_call_operand.vmem [shape: f32[2,33,1], index: 1, kind: input, shape index: {}]   ;;  %s3095_s2 = inlined_call_operand.vmem [shape: f32[50,32], index: 2, kind: input, shape index: {}]   ;;  %s3096_s3 = inlined_call_operand.vmem [shape: f32[32,32], index: 3, kind: input, shape index: {}]   ;;  %s3097_s4 = inlined_call_operand.vmem [shape: f32[1,32], index: 4, kind: input, shape index: {}]   ;;  %s3098_s5 = inlined_call_operand.vmem [shape: f32[96,32], index: 5, kind: input, shape index: {}]   ;;  %s3099_s6 = inlined_call_operand.vmem [shape: f32[1,32], index: 6, kind: input, shape index: {}]   ;;  %s3100_s7 = inlined_call_operand.vmem [shape: f32[96,64], index: 7, kind: input, shape index: {}]   ;;  %s3101_s8 = inlined_call_operand.vmem [shape: f32[1,64], index: 8, kind: input, shape index: {}]   ;;  %s3102_s9 = inlined_call_operand.vmem [shape: f32[192,128], index: 9, kind: input, shape index: {}]   ;;  %s3103_s10 = inlined_call_operand.vmem [shape: f32[1,128], index: 10, kind: input, shape index: {}]   ;;  %s3104_s11 = inlined_call_operand.vmem [shape: f32[4,31,128], index: 11, kind: input, shape index: {}]   ;;  %s3105_s12 = inlined_call_operand.vmem [shape: f32[512,4], index: 12, kind: input, shape index: {}]   ;;  %s3106_s13 = inlined_call_operand.vmem [shape: f32[1,4], index: 13, kind: input, shape index: {}]   ;;  %s3107_s14 = inlined_call_operand.hbm [shape: f32[2,1,4], index: 14, kind: output, shape index: {0}]   ;;  %s3108_s15 = inlined_call_operand.vmem [shape: f32[2,31,64], index: 15, kind: output, shape index: {1}]  }
   0x1   :  { %3114 = sst [smem:[#allocation11_spill]] %s3093_s0 }
   0x2   :  { %3115 = sst [smem:[#allocation12_spill]] %s3094_s1 }
   0x3   :  { %21 = vsyncpa [#allocation6], 0 }
   0x4   :  { %23 = vsyncpa [#allocation6 + $0x1], 0  ;;  %s2422_s18 = smov 0   ;;  %s2424_s19 = smov 0  }
   0x5   :  { %s2426_s20 = smov 0   ;;  %s2428_s21 = smov 0  }
   0x6 LB: > { %3116 = sst [smem:[#allocation8_spill]] %s2329_s20  ;;  %s2443_s22 = sadd.s32 4294967295, %s2333_s21   ;;  %s2333_s21 = sphi %s2428_s21, %s3124_s21   ;;  %s2329_s20 = sphi %s2426_s20, %s3126_s20   ;;  %s2325_s19 = sphi %s2424_s19, %s3128_s19   ;;  %s2321_s18 = sphi %s2422_s18, %s3127_s18  }
   0x7   : > { %s1759_s23 = sadd.s32 4294967294, %s2333_s21   ;;  %s2447_s24 = sadd.s32 1, %s2333_s21  }
   0x8   : > { %3117 = sst [smem:[#allocation9_spill]] %s2447_s24  ;;  %s340_s25 = sadd.s32 1, %s2329_s20 }
   0x9   : > { %s337_s26 = ssub.s32 %s2333_s21, %s2447_s24  ;;  %p350_p0 = scmp.ne.s32.totalorder %s2329_s20, %s2325_s19 }
   0xa   : > { %p338_p1 = scmp.eq.s32.totalorder %s337_s26, 0  ;;  %p351_p2 = scmp.eq.s32.totalorder %s2443_s22, 1 }
   0xb   : > { %p356_p3 = scmp.ne.s32.totalorder %s2325_s19, %s2321_s18  ;;  %p357_p4 = scmp.eq.s32.totalorder %s1759_s23, 1 }
   0xc   : > { %s2458_s27 = scalar_select %p338_p1, %s2329_s20, %s340_s25  }
   0xd   : > { %p2460_p5 = por %p351_p2, %p350_p0  ;;  %p2464_p6 = por %p357_p4, %p356_p3 }
   0xe   : > { %3118 = sst [smem:[#allocation10_spill]] %s2458_s27  ;;  %p1762_p7 = scmp.ge.s32.totalorder %s2333_s21, 1 }
   0xf   : > { %p453_p8 = scmp.lt.s32.totalorder %s2333_s21, 3 }
  0x11   : > { %p454_p9 = pnand %p1762_p7, %p453_p8 }
  0x12   : > { %p510_p10 = scmp.lt.s32.totalorder (!%p454_p9), %s2443_s22, 1  ;;  %v573_v0 = vld [vmem:[%s3095_s2] sm:$0xff] (!%p454_p9)  ;;  %v574_v1 = vld [vmem:[%s3095_s2 + $0x8] sm:$0xff] (!%p454_p9)  ;;  %v575_v2 = vld [vmem:[%s3095_s2 + $0x10] sm:$0xff] (!%p454_p9)  ;;  %v2335_v3 = vmov (!%p454_p9), 0   ;;  %v2336_v6 = vmov (!%p454_p9), 0.0|0.0   ;;  %v541_v26 = vlaneseq (!%p454_p9) }
  0x13   : > { %457 = sbr.rel (%p454_p9) target bundleno = 1929 (0x789), region = 76  ;;  %2260 = vset.pattern.permute.xlu1 (!%p454_p9), %v2335_v3  ;;  %2259 = vset.pattern.permute.xlu0 (!%p454_p9), %v2335_v3  ;;  %v2051_v4 = vpack.c.bf16 (!%p454_p9), %v574_v1, %v573_v0  ;;  %v576_v5 = vld [vmem:[%s3095_s2 + $0x18] sm:$0xff] (!%p454_p9)  ;;  %v577_v8 = vld [vmem:[%s3095_s2 + $0x20] sm:$0xff] (!%p454_p9)  ;;  %v578_v9 = vld [vmem:[%s3095_s2 + $0x28] sm:$0xff] (!%p454_p9)  ;;  %s3121_s0 = sld [smem:[#allocation11_spill]] (!%p454_p9)  ;;  %vm2337_vm0 = vmmov (!%p454_p9), 0  }
  0x14   : > { %2050 = vmatprep.subr.bf16.mxu0 (!%p454_p9), %v2336_v6  ;;  %2059 = vmatprep.subr.bf16.mxu1 (!%p454_p9), %v2336_v6  ;;  %v2054_v7 = vpack.c.bf16 (!%p454_p9), %v576_v5, %v575_v2  ;;  %v2057_v12 = vpack.c.bf16 (!%p454_p9), %v578_v9, %v577_v8  ;;  %v2338_v15 = vmov (!%p454_p9), 0.0   ;;  %s3122_s1 = sld [smem:[#allocation12_spill]] (!%p454_p9)  ;;  %v579_v16 = vld [vmem:[%s3095_s2 + $0x30] sm:$0x3] (!%p454_p9)  ;;  %vm596_vm1 = vcmask (!%p454_p9), 1041408   ;;  %v720_v23 = vld [vmem:[%s3096_s3] sm:$0xff] (!%p454_p9) }
  0x15   : > { %2052 = vmatpush3.bf16.msra.mxu0 (!%p454_p9), %v2051_v4  ;;  %1952 = vmatprep.mubr.msk.f32.mxu0 (!%p454_p9), %vm2337_vm0, %v2338_v15  ;;  %v721_v24 = vld [vmem:[%s3096_s3 + $0x8] sm:$0xff] (!%p454_p9)  ;;  %v542_v27 = vand.u32 (!%p454_p9), 127, %v541_v26  ;;  %vm580_vm2 = vcmask (!%p454_p9), 408576   ;;  %v722_v38 = vld [vmem:[%s3096_s3 + $0x10] sm:$0xff] (!%p454_p9)  ;;  %v723_v39 = vld [vmem:[%s3096_s3 + $0x18] sm:$0xff] (!%p454_p9)  ;;  %vm731_vm8 = vcmask (!%p454_p9), 261120  }
  0x16   : > { %2053 = vmatprep.subr.bf16.mxu0 (!%p454_p9), %v2336_v6  ;;  %1975 = vmatprep.mubr.msk.f32.mxu1 (!%p454_p9), %vm2337_vm0, %v2338_v15  ;;  %v2060_v25 = vpack.c.bf16 (!%p454_p9), %v721_v24, %v720_v23  ;;  %v2063_v40 = vpack.c.bf16 (!%p454_p9), %v723_v39, %v722_v38  ;;  %vm525_vm9 = vcmask (!%p454_p9), 253952   ;;  %v900_v61 = vld [vmem:[%s3098_s5] sm:$0xff] (!%p454_p9)  ;;  %v901_v62 = vld [vmem:[%s3098_s5 + $0x8] sm:$0xff] (!%p454_p9)  ;;  %v902_v63 = vld [vmem:[%s3098_s5 + $0x10] sm:$0xff] (!%p454_p9)  ;;  %vm895_vm10 = vcmask (!%p454_p9), 523264   ;;  %s3123_s20 = smov (!%p454_p9), 64  }
  0x17   : > { %526 = vst.msk [vmem:[#allocation3] sm:$0x1] (!%p454_p9), %vm525_vm9, %v2338_v15  ;;  %527 = vst.msk [vmem:[#allocation3 + $0x20] sm:$0x1] (!%p454_p9), %vm525_vm9, %v2338_v15  ;;  %v2065_v0 = vpack.c.bf16 (!%p454_p9), %v901_v62, %v900_v61  ;;  %v903_v1 = vld [vmem:[%s3098_s5 + $0x18] sm:$0xff] (!%p454_p9)  ;;  %v904_v3 = vld [vmem:[%s3098_s5 + $0x20] sm:$0xff] (!%p454_p9) }
  0x18   : > { %2061 = vmatpush3.bf16.msra.mxu1 (!%p454_p9), %v2060_v25  ;;  %v2069_v2 = vpack.c.bf16 (!%p454_p9), %v903_v1, %v902_v63  ;;  %v905_v4 = vld [vmem:[%s3098_s5 + $0x28] sm:$0xff] (!%p454_p9)  ;;  %v907_v8 = vld [vmem:[%s3098_s5 + $0x38] sm:$0xff] (!%p454_p9)  ;;  %vm919_vm11 = vcmask (!%p454_p9), 785408   ;;  %vm1024_vm12 = vcmask (!%p454_p9), 260096   ;;  %vm528_vm13 = vcmask (!%p454_p9), 516096   ;;  %s501_s17 = sand.u32 (!%p454_p9), 1, %s2325_s19  }
  0x19   : > { %2055 = vmatpush3.bf16.msra.mxu0 (!%p454_p9), %v2054_v7  ;;  %2062 = vmatprep.subr.bf16.mxu1 (!%p454_p9), %v2336_v6  ;;  %v2073_v5 = vpack.c.bf16 (!%p454_p9), %v905_v4, %v904_v3  ;;  %v906_v7 = vld [vmem:[%s3098_s5 + $0x30] sm:$0xff] (!%p454_p9)  ;;  %v1075_v3 = vld [vmem:[%s3100_s7 + $0x8] sm:$0xff] (!%p454_p9)  ;;  %529 = vst.msk [vmem:[#allocation4] sm:$0x1] (!%p454_p9), %vm528_vm13, %v2338_v15  ;;  %530 = vst.msk [vmem:[#allocation4 + $0x20] sm:$0x1] (!%p454_p9), %vm528_vm13, %v2338_v15 }
  0x1a   : > { %s2484_s24 = scalar_select %p510_p10, %s2443_s22, 1  ;;  %2056 = vmatprep.subr.bf16.mxu0 %v2336_v6  ;;  %v2077_v9 = vpack.c.bf16 %v907_v8, %v906_v7  ;;  %v1076_v4 = vld [vmem:[%s3100_s7 + $0x10] sm:$0xff]  ;;  %v1077_v7 = vld [vmem:[%s3100_s7 + $0x18] sm:$0xff]  ;;  %vm1197_vm14 = vcmask 522240   ;;  %vm1373_vm15 = vcmask 1046528  }
  0x1b   : > { %v2093_v8 = vpack.c.bf16 %v1077_v7, %v1076_v4  ;;  %v1238_v4 = vld [vmem:[%s3102_s9 + $0x38] sm:$0xff]  ;;  %v1239_v7 = vld [vmem:[%s3102_s9 + $0x40] sm:$0xff]  ;;  %s1647_s16 = scalar_lea.sflag [#allocation6], %s501_s17 }
  0x1c   : > { %s2213_s30 = smul.u32 40, %s2484_s24  ;;  %2064 = vmatpush3.bf16.msra.mxu1 %v2063_v40 }
  0x1d   : > { %2058 = vmatpush3.bf16.msra.mxu0 %v2057_v12  ;;  %2066 = vmatprep.subr.bf16.mxu1 %v2065_v0 }
  0x1e   : > { %s514_s26 = scalar_lea.vmem %s3121_s0, %s2213_s30  ;;  %s519_s23 = scalar_lea.vmem %s3122_s1, %s2213_s30  ;;  %1950 = vmatprep.subr.mxu0 %v2338_v15 }
  0x1f   : > { %v533_v10 = vld [vmem:[%s514_s26 + $0x10] sm:$0xff]  ;;  %v531_v11 = vld [vmem:[%s514_s26] sm:$0xff]  ;;  %v534_v13 = vld [vmem:[%s514_s26 + $0x18] sm:$0xff]  ;;  %s2339_s0 = smov 32   ;;  %s3112_s1 = smov 64  }
  0x20   : > { %550 = vperm.xlu1 %2260, %v533_v10   ;;  %544 = vperm.xlu0 %2259, %v531_v11   ;;  %v532_v14 = vld [vmem:[%s514_s26 + $0x8] sm:$0xff]  ;;  %v536_v17 = vld [vmem:[%s519_s23] sm:$0xff]  ;;  %v538_v19 = vld [vmem:[%s519_s23 + $0x10] sm:$0xff] }
  0x21   : > { %v535_v18 = vld [vmem:[%s514_s26 + $0x20] sm:$0x1]  ;;  %1951 = vmatpush3.msk.msra.mxu0 %vm596_vm1, %v579_v16  ;;  %v537_v20 = vld [vmem:[%s519_s23 + $0x8] sm:$0xff]  ;;  %v539_v22 = vld [vmem:[%s519_s23 + $0x18] sm:$0xff] }
  0x22   : > { %v540_v21 = vld [vmem:[%s519_s23 + $0x20] sm:$0x1] }
  0x23   : > { %v1778_v10 = vld [vmem:[%s3097_s4] ss:$0 sm:$0xff] }
  0x24   : > { %553 = vperm.xlu1 %2260, %v534_v13   ;;  %547 = vperm.xlu0 %2259, %v532_v14  }
  0x28   : > { %692 = vperm.xlu1 %2260, %v536_v17   ;;  %556 = vperm.xlu0 %2259, %v535_v18  }
  0x2c   : > { %702 = vperm.xlu1 %2260, %v538_v19   ;;  %697 = vperm.xlu0 %2259, %v537_v20  }
  0x30   : > { %712 = vperm.xlu1 %2260, %v540_v21   ;;  %707 = vperm.xlu0 %2259, %v539_v22   ;;  %v908_v21 = vld [vmem:[%s3098_s5 + $0x40] sm:$0xff]  ;;  %v909_v22 = vld [vmem:[%s3098_s5 + $0x48] sm:$0xff] }
  0x31   : > { %v2081_v24 = vpack.c.bf16 %v909_v22, %v908_v21 }
  0x9f   : > { %v545_v28 = vpop.permute.xlu0 %544  ;;  %v551_v30 = vpop.permute.xlu1 %550 }
  0xa0   : > { %vm558_vm3 = vcmp.eq.s32.totalorder %v545_v28, %v542_v27  ;;  %vm560_vm4 = vcmp.eq.s32.totalorder %v551_v30, %v542_v27  ;;  %v910_v28 = vld [vmem:[%s3098_s5 + $0x50] sm:$0xff] }
  0xa1   : > { %v1767_v29 = vsel %vm558_vm3, 1.0, %v2338_v15  ;;  %v1769_v33 = vsel %vm560_vm4, 1.0, %v2338_v15 }
  0xa2   : > { %1953 = vmatmul.mubr.msk.f32.vlgmr.msra.gmra.mrb[0].mxu0 %vm580_vm2, %v1767_v29  ;;  %v911_v29 = vld [vmem:[%s3098_s5 + $0x58] sm:$0xff] }
  0xa3   : > { %v548_v31 = vpop.permute.xlu0 %547  ;;  %1955 = vmatprep.mubr.msk.f32.mxu0 %vm2337_vm0, %v2338_v15  ;;  %v554_v34 = vpop.permute.xlu1 %553 }
  0xa4   : > { %vm559_vm5 = vcmp.eq.s32.totalorder %v548_v31, %v542_v27  ;;  %vm561_vm6 = vcmp.eq.s32.totalorder %v554_v34, %v542_v27  ;;  %v2085_v31 = vpack.c.bf16 %v911_v29, %v910_v28 }
  0xa5   : > { %v1768_v32 = vsel %vm559_vm5, 1.0, %v2338_v15  ;;  %v1770_v36 = vsel %vm561_vm6, 1.0, %v2338_v15 }
  0xa6   : > { %1956 = vmatmul.mubr.msk.f32.gmra.mrb[2].mxu0 %vm580_vm2, %v1768_v32 }
  0xa7   : > { %1958 = vmatprep.mubr.msk.f32.mxu0 %vm2337_vm0, %v2338_v15  ;;  %v557_v35 = vpop.permute.xlu0 %556  ;;  %v693_v41 = vpop.permute.xlu1 %692 }
  0xa8   : > { %vm562_vm7 = vcmp.eq.s32.totalorder %v557_v35, %v542_v27 }
  0xa9   : > { %v1771_v37 = vsel %vm562_vm7, 1.0, %v2338_v15 }
  0xaa   : > { %1959 = vmatmul.mubr.msk.f32.gmra.mrb[4].mxu0 %vm580_vm2, %v1769_v33 }
  0xab   : > { %1961 = vmatprep.mubr.msk.f32.mxu0 %vm2337_vm0, %v2338_v15  ;;  %v698_v45 = vpop.permute.xlu0 %697  ;;  %v703_v49 = vpop.permute.xlu1 %702 }
  0xae   : > { %1962 = vmatmul.mubr.msk.f32.gmra.mrb[6].mxu0 %vm580_vm2, %v1770_v36 }
  0xaf   : > { %1964 = vmatprep.mubr.msk.f32.mxu0 %vm2337_vm0, %v2338_v15  ;;  %v708_v53 = vpop.permute.xlu0 %707  ;;  %v713_v57 = vpop.permute.xlu1 %712 }
  0xb2   : > { %1965 = vmatmul.mubr.msk.f32.gmra.mrb[8].mxu0 %vm580_vm2, %v1771_v37 }
 0x175   : > { %v666_v42 = vpop.f32.mrb[0].mxu0 }
 0x176   : > { %v715_v43 = vmul.f32 %v693_v41, %v666_v42  ;;  %v1954_v44 = vpop.f32.mrb[1].mxu0 }
 0x178   : > { %1976 = vmatmul.mubr.msk.f32.vlgmr.msra.gmra.mrb[0].mxu1 %vm731_vm8, %v715_v43 }
 0x179   : > { %v671_v46 = vpop.f32.mrb[2].mxu0  ;;  %1978 = vmatprep.mubr.msk.f32.mxu1 %vm2337_vm0, %v2338_v15  ;;  %2068 = vmatpush3.bf16.msra.mxu1 %v2065_v0 }
 0x17a   : > { %v716_v47 = vmul.f32 %v698_v45, %v671_v46  ;;  %v1957_v48 = vpop.f32.mrb[3].mxu0  ;;  %2070 = vmatprep.subr.bf16.mxu1 %v2069_v2 }
 0x17c   : > { %1979 = vmatmul.mubr.msk.f32.gmra.mrb[2].mxu1 %vm731_vm8, %v716_v47 }
 0x17d   : > { %v676_v50 = vpop.f32.mrb[4].mxu0  ;;  %1981 = vmatprep.mubr.msk.f32.mxu1 %vm2337_vm0, %v2338_v15  ;;  %2072 = vmatpush3.bf16.msra.mxu1 %v2069_v2  ;;  %v1074_v2 = vld [vmem:[%s3100_s7] sm:$0xff] }
 0x17e   : > { %v717_v51 = vmul.f32 %v703_v49, %v676_v50  ;;  %v1960_v52 = vpop.f32.mrb[5].mxu0  ;;  %2074 = vmatprep.subr.bf16.mxu1 %v2073_v5 }
 0x180   : > { %1982 = vmatmul.mubr.msk.f32.gmra.mrb[4].mxu1 %vm731_vm8, %v717_v51 }
 0x181   : > { %v681_v54 = vpop.f32.mrb[6].mxu0  ;;  %1984 = vmatprep.mubr.msk.f32.mxu1 %vm2337_vm0, %v2338_v15  ;;  %2076 = vmatpush3.bf16.msra.mxu1 %v2073_v5  ;;  %v2089_v5 = vpack.c.bf16 %v1075_v3, %v1074_v2  ;;  %v1237_v3 = vld [vmem:[%s3102_s9 + $0x30] sm:$0xff] }
 0x182   : > { %v718_v55 = vmul.f32 %v708_v53, %v681_v54  ;;  %v1963_v56 = vpop.f32.mrb[7].mxu0  ;;  %2078 = vmatprep.subr.bf16.mxu1 %v2077_v9 }
 0x183   : > { %2090 = vmatprep.subr.bf16.mxu0 %v2089_v5 }
 0x184   : > { %1985 = vmatmul.mubr.msk.f32.gmra.mrb[6].mxu1 %vm731_vm8, %v718_v55  ;;  %2092 = vmatpush3.bf16.msra.mxu0 %v2089_v5  ;;  %v2123_v5 = vpack.c.bf16 %v1238_v4, %v1237_v3  ;;  %v1441_v4 = vld [vmem:[%s3105_s12 + $0x10] sm:$0xff] }
 0x185   : > { %v686_v58 = vpop.f32.mrb[8].mxu0  ;;  %1987 = vmatprep.mubr.msk.f32.mxu1 %vm2337_vm0, %v2338_v15  ;;  %2080 = vmatpush3.bf16.msra.mxu1 %v2077_v9  ;;  %v1078_v9 = vld [vmem:[%s3100_s7 + $0x20] sm:$0xff]  ;;  %vm1644_vm0 = vcmask 24576  }
 0x186   : > { %v719_v59 = vmul.f32 %v713_v57, %v686_v58  ;;  %v1966_v60 = vpop.f32.mrb[9].mxu0  ;;  %2082 = vmatprep.subr.bf16.mxu1 %v2081_v24  ;;  %2094 = vmatprep.subr.bf16.mxu0 %v2093_v8  ;;  %v1235_v15 = vld [vmem:[%s3102_s9 + $0x20] sm:$0xff] }
 0x188   : > { %1988 = vmatmul.mubr.msk.f32.gmra.mrb[8].mxu1 %vm731_vm8, %v719_v59  ;;  %2096 = vmatpush3.bf16.msra.mxu0 %v2093_v8  ;;  %v1240_v8 = vld [vmem:[%s3102_s9 + $0x48] sm:$0xff] }
 0x189   : > { %2084 = vmatpush3.bf16.msra.mxu1 %v2081_v24 }
 0x18a   : > { %2086 = vmatprep.subr.bf16.mxu1 %v2085_v31 }
 0x18d   : > { %2088 = vmatpush3.bf16.msra.mxu1 %v2085_v31 }
 0x18e   : > { %2113 = vmatprep.subr.bf16.mxu1 %v2336_v6 }
 0x24b   : > { %v813_v11 = vpop.f32.mrb[0].mxu1 }
 0x24c   : > { %v814_v12 = vadd.f32 %v1778_v10, %v813_v11  ;;  %v1977_v13 = vpop.f32.mrb[1].mxu1 }
 0x24d   : > { %v1081_v13 = vld [vmem:[%s3100_s7 + $0x38] sm:$0xff] }
 0x24e   : > { %2261 = vtanh.f32 %v814_v12  ;;  %v1080_v12 = vld [vmem:[%s3100_s7 + $0x30] sm:$0xff] }
 0x24f   : > { %v818_v14 = vpop.f32.mrb[2].mxu1 }
 0x250   : > { %v819_v16 = vadd.f32 %v1778_v10, %v818_v14  ;;  %v1980_v17 = vpop.f32.mrb[3].mxu1  ;;  %v2101_v14 = vpack.c.bf16 %v1081_v13, %v1080_v12  ;;  %v1243_v13 = vld [vmem:[%s3102_s9 + $0x60] sm:$0xff] }
 0x252   : > { %2263 = vtanh.f32 %v819_v16  ;;  %v1784_v16 = vld [vmem:[%s3099_s6] ss:$0 sm:$0xff] }
 0x253   : > { %v823_v18 = vpop.f32.mrb[4].mxu1 }
 0x254   : > { %v824_v19 = vadd.f32 %v1778_v10, %v823_v18  ;;  %v1983_v20 = vpop.f32.mrb[5].mxu1  ;;  %v1082_v18 = vld [vmem:[%s3100_s7 + $0x40] sm:$0xff] }
 0x256   : > { %2265 = vtanh.f32 %v824_v19  ;;  %v1083_v19 = vld [vmem:[%s3100_s7 + $0x48] sm:$0xff] }
 0x257   : > { %v828_v23 = vpop.f32.mrb[6].mxu1  ;;  %v2105_v22 = vpack.c.bf16 %v1083_v19, %v1082_v18  ;;  %v1246_v18 = vld [vmem:[%s3102_s9 + $0x78] sm:$0xff] }
 0x258   : > { %v2262_v25 = vpop.eup %2261  ;;  %v829_v26 = vadd.f32 %v1778_v10, %v828_v23  ;;  %v1986_v27 = vpop.f32.mrb[7].mxu1 }
 0x259   : > { %842 = vst.msk [vmem:[#allocation2] sm:$0xff] %vm731_vm8, %v2262_v25  ;;  %v1085_v27 = vld [vmem:[%s3100_s7 + $0x58] sm:$0xff] }
 0x25a   : > { %2267 = vtanh.f32 %v829_v26  ;;  %v1084_v26 = vld [vmem:[%s3100_s7 + $0x50] sm:$0xff] }
 0x25b   : > { %v833_v30 = vpop.f32.mrb[8].mxu1  ;;  %v2109_v28 = vpack.c.bf16 %v1085_v27, %v1084_v26  ;;  %v1251_v26 = vld [vmem:[%s3102_s9 + $0xa0] sm:$0xff]  ;;  %v1252_v27 = vld [vmem:[%s3102_s9 + $0xa8] sm:$0xff] }
 0x25c   : > { %v2264_v32 = vpop.eup %2263  ;;  %v834_v33 = vadd.f32 %v1778_v10, %v833_v30  ;;  %v1989_v34 = vpop.f32.mrb[9].mxu1  ;;  %v1079_v10 = vld [vmem:[%s3100_s7 + $0x28] sm:$0xff] }
 0x25d   : > { %843 = vst.msk [vmem:[#allocation2 + $0x8] sm:$0xff] %vm731_vm8, %v2264_v32  ;;  %v2097_v11 = vpack.c.bf16 %v1079_v10, %v1078_v9  ;;  %v2126_v9 = vpack.c.bf16 %v1240_v8, %v1239_v7  ;;  %v1241_v10 = vld [vmem:[%s3102_s9 + $0x50] sm:$0xff]  ;;  %v1459_v8 = vld [vmem:[%s3105_s12 + $0xa0] sm:$0xff] }
 0x25e   : > { %2269 = vtanh.f32 %v834_v33 }
 0x25f   : > { %2098 = vmatprep.subr.bf16.mxu0 %v2097_v11 }
 0x260   : > { %v2266_v35 = vpop.eup %2265  ;;  %v847_v47 = vld [vmem:[#allocation2] sm:$0xff]  ;;  %2100 = vmatpush3.bf16.msra.mxu0 %v2097_v11  ;;  %v1242_v11 = vld [vmem:[%s3102_s9 + $0x58] sm:$0xff] }
 0x261   : > { %844 = vst.msk [vmem:[#allocation2 + $0x10] sm:$0xff] %vm731_vm8, %v2266_v35  ;;  %2102 = vmatprep.subr.bf16.mxu0 %v2101_v14  ;;  %v2129_v12 = vpack.c.bf16 %v1242_v11, %v1241_v10  ;;  %v1443_v11 = vld [vmem:[%s3105_s12 + $0x20] sm:$0xff] }
 0x264   : > { %v2268_v36 = vpop.eup %2267  ;;  %v851_v37 = vld [vmem:[#allocation2 + $0x1] sm:$0xff]  ;;  %2104 = vmatpush3.bf16.msra.mxu0 %v2101_v14 }
 0x265   : > { %845 = vst.msk [vmem:[#allocation2 + $0x18] sm:$0xff] %vm731_vm8, %v2268_v36  ;;  %863 = vrot.lane.b32.xlu0 %v851_v37, %s2339_s0  ;;  %v855_v39 = vld [vmem:[#allocation2 + $0x2] sm:$0xff]  ;;  %2106 = vmatprep.subr.bf16.mxu0 %v2105_v22 }
 0x266   : > { %v848_v52 = vld [vmem:[#allocation2 + $0x8] sm:$0xff] }
 0x267   : > { %v1244_v14 = vld [vmem:[%s3102_s9 + $0x68] sm:$0xff] }
 0x268   : > { %v2270_v38 = vpop.eup %2269  ;;  %v852_v40 = vld [vmem:[#allocation2 + $0x9] sm:$0xff]  ;;  %2108 = vmatpush3.bf16.msra.mxu0 %v2105_v22 }
 0x269   : > { %846 = vst.msk [vmem:[#allocation2 + $0x20] sm:$0x1] %vm525_vm9, %v2270_v38  ;;  %879 = vrot.lane.b32.xlu0 %v855_v39, %s3112_s1  ;;  %865 = vrot.lane.b32.xlu1 %v852_v40, %s2339_s0  ;;  %v856_v41 = vld [vmem:[#allocation2 + $0xa] sm:$0xff] }
 0x26a   : > { %v849_v57 = vld [vmem:[#allocation2 + $0x10] sm:$0xff]  ;;  %2110 = vmatprep.subr.bf16.mxu0 %v2109_v28 }
 0x26c   : > { %v853_v42 = vld [vmem:[#allocation2 + $0x11] sm:$0xff]  ;;  %v854_v43 = vld [vmem:[#allocation2 + $0x19] sm:$0x7f]  ;;  %2112 = vmatpush3.bf16.msra.mxu0 %v2109_v28  ;;  %v2144_v28 = vpack.c.bf16 %v1252_v27, %v1251_v26 }
 0x26d   : > { %881 = vrot.lane.b32.xlu1 %v856_v41, %s3112_s1  ;;  %867 = vrot.lane.b32.xlu0 %v853_v42, %s2339_s0  ;;  %v857_v44 = vld [vmem:[#allocation2 + $0x12] sm:$0xff] }
 0x26e   : > { %v850_v62 = vld [vmem:[#allocation2 + $0x18] sm:$0x7f]  ;;  %v1465_v27 = vld [vmem:[%s3105_s12 + $0xd0] sm:$0xff] }
 0x270   : > { %v858_v45 = vld [vmem:[#allocation2 + $0x1a] sm:$0x7f] }
 0x271   : > { %869 = vrot.lane.b32.xlu1 %v854_v43, %s2339_s0  ;;  %883 = vrot.lane.b32.xlu0 %v857_v44, %s3112_s1 }
 0x275   : > { %885 = vrot.lane.b32.xlu1 %v858_v45, %s3112_s1  ;;  %s1814_s1 = sshll.u32 %s2484_s24, 5  ;;  %s1811_s24 = sshll.u32 %s2443_s22, 4 }
 0x276   : > { %s524_s23 = scalar_lea.vmem %s3108_s15, %s1814_s1  ;;  %s3051_s25 = scalar_lea.hbm %s3107_s14, %s1811_s24 }
 0x277   : > { %s2341_s22 = smov [#allocation5]  }
 0x278   : > { %s2275_s26 = sshll.u32 %s2341_s22, 4  ;;  %s2276_s26 = int_to_ptr.vmem [resolvable:$false] %s2275_s26 }
 0x2d7   : > { %v864_v46 = vpop.permute.xlu0 %863 }
 0x2d8   : > { %v891_v48 = vsel %vm731_vm8, %v847_v47, %v864_v46 }
 0x2db   : > { %v866_v49 = vpop.permute.xlu1 %865  ;;  %v880_v50 = vpop.permute.xlu0 %879 }
 0x2dc   : > { %v896_v51 = vsel %vm895_vm10, %v891_v48, %v880_v50  ;;  %v892_v53 = vsel %vm731_vm8, %v848_v52, %v866_v49 }
 0x2dd   : > { %2014 = vmatprep.mubr.msk.f32.mxu1 %vm919_vm11, %v896_v51 }
 0x2df   : > { %v882_v54 = vpop.permute.xlu1 %881  ;;  %v868_v55 = vpop.permute.xlu0 %867 }
 0x2e0   : > { %v897_v56 = vsel %vm895_vm10, %v892_v53, %v882_v54  ;;  %v893_v58 = vsel %vm731_vm8, %v849_v57, %v868_v55 }
 0x2e1   : > { %2015 = vmatmul.mubr.msk.f32.vlgmr.msra.gmra.mrb[10].mxu1 %vm919_vm11, %v897_v56 }
 0x2e3   : > { %v870_v59 = vpop.permute.xlu1 %869  ;;  %v884_v60 = vpop.permute.xlu0 %883 }
 0x2e4   : > { %v898_v61 = vsel %vm895_vm10, %v893_v58, %v884_v60  ;;  %v894_v63 = vsel %vm731_vm8, %v850_v62, %v870_v59  ;;  %v1231_v59 = vld [vmem:[%s3102_s9] sm:$0xff]  ;;  %v1232_v60 = vld [vmem:[%s3102_s9 + $0x8] sm:$0xff] }
 0x2e5   : > { %2017 = vmatprep.mubr.msk.f32.mxu1 %vm919_vm11, %v898_v61  ;;  %v1233_v61 = vld [vmem:[%s3102_s9 + $0x10] sm:$0xff]  ;;  %v2114_v62 = vpack.c.bf16 %v1232_v60, %v1231_v59  ;;  %v1455_v60 = vld [vmem:[%s3105_s12 + $0x80] sm:$0xff] }
 0x2e7   : > { %v886_v0 = vpop.permute.xlu1 %885  ;;  %2115 = vmatpush1.bf16.msra.mxu1 %v2114_v62 }
 0x2e8   : > { %v899_v1 = vsel %vm895_vm10, %v894_v63, %v886_v0  ;;  %v1234_v63 = vld [vmem:[%s3102_s9 + $0x18] sm:$0xff]  ;;  %2116 = vmatprep.subr.bf16.mxu1 %v2336_v6 }
 0x2e9   : > { %2018 = vmatmul.mubr.msk.f32.gmra.mrb[12].mxu1 %vm919_vm11, %v899_v1  ;;  %v2117_v0 = vpack.c.bf16 %v1234_v63, %v1233_v61  ;;  %v1236_v1 = vld [vmem:[%s3102_s9 + $0x28] sm:$0xff]  ;;  %v1439_v63 = vld [vmem:[%s3105_s12] sm:$0xff] }
 0x2ea   : > { %v2120_v2 = vpack.c.bf16 %v1236_v1, %v1235_v15  ;;  %v1456_v61 = vld [vmem:[%s3105_s12 + $0x88] sm:$0xff]  ;;  %v1457_v1 = vld [vmem:[%s3105_s12 + $0x90] sm:$0xff] }
 0x2eb   : > { %2118 = vmatpush1.bf16.msra.mxu1 %v2117_v0  ;;  %v2149_v62 = vpack.c.bf16 %v1456_v61, %v1455_v60  ;;  %v1440_v0 = vld [vmem:[%s3105_s12 + $0x8] sm:$0xff] }
 0x2ec   : > { %2119 = vmatprep.subr.bf16.mxu1 %v2336_v6  ;;  %v2151_v15 = vpack.c.bf16 %v1440_v0, %v1439_v63  ;;  %v1800_v60 = vld [vmem:[%s3104_s11 + $0x28] sm:$0xff] }
 0x2ed   : > { %2150 = vmatprep.subr.bf16.mxu0 %v2149_v62  ;;  %v1804_v61 = vld [vmem:[%s3104_s11 + $0x48] sm:$0xff] }
 0x2ee   : > { %v1808_v62 = vld [vmem:[%s3104_s11 + $0x68] sm:$0xff] }
 0x2ef   : > { %2121 = vmatpush1.bf16.msra.mxu1 %v2120_v2  ;;  %v1458_v2 = vld [vmem:[%s3105_s12 + $0x98] sm:$0xff] }
 0x2f0   : > { %2122 = vmatprep.subr.bf16.mxu1 %v2336_v6  ;;  %v2153_v3 = vpack.c.bf16 %v1458_v2, %v1457_v1 }
 0x2f3   : > { %2124 = vmatpush1.bf16.msra.mxu1 %v2123_v5  ;;  %v1442_v5 = vld [vmem:[%s3105_s12 + $0x18] sm:$0xff] }
 0x2f4   : > { %2125 = vmatprep.subr.bf16.mxu1 %v2336_v6  ;;  %v2155_v7 = vpack.c.bf16 %v1442_v5, %v1441_v4  ;;  %v1365_v5 = vld [vmem:[%s3104_s11 + $0x10] sm:$0xff] }
 0x2f7   : > { %2127 = vmatpush1.bf16.msra.mxu1 %v2126_v9  ;;  %v1460_v9 = vld [vmem:[%s3105_s12 + $0xa8] sm:$0xff] }
 0x2f8   : > { %2128 = vmatprep.subr.bf16.mxu1 %v2336_v6  ;;  %v2157_v10 = vpack.c.bf16 %v1460_v9, %v1459_v8 }
 0x2fb   : > { %2130 = vmatpush1.bf16.msra.mxu1 %v2129_v12  ;;  %v1444_v12 = vld [vmem:[%s3105_s12 + $0x28] sm:$0xff] }
 0x2fc   : > { %2131 = vmatprep.subr.bf16.mxu1 %v2336_v6 }
 0x3b4   : > { %v2016_v17 = vpop.f32.mrb[10].mxu1 }
 0x3b5   : > { %v1004_v20 = vadd.f32 %v2016_v17, %v1784_v16  ;;  %v998_v21 = vpop.f32.mrb[11].mxu1  ;;  %v1245_v17 = vld [vmem:[%s3102_s9 + $0x70] sm:$0xff] }
 0x3b6   : > { %v999_v23 = vadd.f32 %v1784_v16, %v998_v21  ;;  %v2135_v19 = vpack.c.bf16 %v1246_v18, %v1245_v17  ;;  %v1248_v21 = vld [vmem:[%s3102_s9 + $0x88] sm:$0xff]  ;;  %v1445_v18 = vld [vmem:[%s3105_s12 + $0x30] sm:$0xff] }
 0x3b7   : > { %v1018_v24 = vmax.f32 %v1004_v20, 0.0  ;;  %v1247_v20 = vld [vmem:[%s3102_s9 + $0x80] sm:$0xff] }
 0x3b8   : > { %v1017_v25 = vmax.f32 %v999_v23, 0.0  ;;  %v2138_v22 = vpack.c.bf16 %v1248_v21, %v1247_v20  ;;  %v1249_v23 = vld [vmem:[%s3102_s9 + $0x90] sm:$0xff]  ;;  %v1463_v21 = vld [vmem:[%s3105_s12 + $0xc0] sm:$0xff] }
 0x3b9   : > { %1022 = vst.msk [vmem:[#allocation3 + $0x9] sm:$0xff] %vm731_vm8, %v1018_v24  ;;  %1040 = vrot.lane.b32.xlu1 %v1018_v24, %s2339_s0  ;;  %v1250_v24 = vld [vmem:[%s3102_s9 + $0x98] sm:$0xff] }
 0x3ba   : > { %1021 = vst.msk [vmem:[#allocation3 + $0x1] sm:$0xff] %vm731_vm8, %v1017_v25  ;;  %1038 = vrot.lane.b32.xlu0 %v1017_v25, %s2339_s0  ;;  %v2141_v25 = vpack.c.bf16 %v1250_v24, %v1249_v23  ;;  %v1447_v24 = vld [vmem:[%s3105_s12 + $0x40] sm:$0xff] }
 0x3bc   : > { %v2019_v29 = vpop.f32.mrb[12].mxu1 }
 0x3bd   : > { %v1014_v30 = vadd.f32 %v2019_v29, %v1784_v16  ;;  %v1008_v31 = vpop.f32.mrb[13].mxu1  ;;  %v1253_v29 = vld [vmem:[%s3102_s9 + $0xb0] sm:$0xff] }
 0x3be   : > { %v1009_v32 = vadd.f32 %v1784_v16, %v1008_v31  ;;  %v2132_v16 = vpack.c.bf16 %v1244_v14, %v1243_v13  ;;  %v2159_v13 = vpack.c.bf16 %v1444_v12, %v1443_v11  ;;  %v1461_v14 = vld [vmem:[%s3105_s12 + $0xb0] sm:$0xff] }
 0x3bf   : > { %v1020_v33 = vmax.f32 %v1014_v30, 0.0  ;;  %v1254_v30 = vld [vmem:[%s3102_s9 + $0xb8] sm:$0xff]  ;;  %v1801_v12 = vld [vmem:[%s3104_s11 + $0x30] sm:$0xff] }
 0x3c0   : > { %v1019_v34 = vmax.f32 %v1009_v32, 0.0  ;;  %2133 = vmatpush1.bf16.msra.mxu1 %v2132_v16  ;;  %v2147_v31 = vpack.c.bf16 %v1254_v30, %v1253_v29  ;;  %v1789_v32 = vld [vmem:[%s3101_s8] ss:$0 sm:$0xff]  ;;  %v1462_v16 = vld [vmem:[%s3105_s12 + $0xb8] sm:$0xff]  ;;  %v1449_v30 = vld [vmem:[%s3105_s12 + $0x50] sm:$0xff] }
 0x3c1   : > { %1025 = vst.msk [vmem:[#allocation3 + $0x19] sm:$0x7f] %vm1024_vm12, %v1020_v33  ;;  %v1030_v35 = vld [vmem:[#allocation3 + $0x2] sm:$0xff]  ;;  %2134 = vmatprep.subr.bf16.mxu1 %v2336_v6  ;;  %v2161_v17 = vpack.c.bf16 %v1462_v16, %v1461_v14 }
 0x3c2   : > { %1023 = vst.msk [vmem:[#allocation3 + $0x11] sm:$0xff] %vm731_vm8, %v1019_v34  ;;  %1054 = vrot.lane.b32.xlu0 %v1030_v35, %s3123_s20  ;;  %v1026_v40 = vld [vmem:[#allocation3] sm:$0xff]  ;;  %v1027_v46 = vld [vmem:[#allocation3 + $0x8] sm:$0xff] }
 0x3c3   : > { %v1809_v14 = vld [vmem:[%s3104_s11 + $0x70] sm:$0xff] }
 0x3c4   : > { %2136 = vmatpush1.bf16.msra.mxu1 %v2135_v19  ;;  %v1446_v19 = vld [vmem:[%s3105_s12 + $0x38] sm:$0xff] }
 0x3c5   : > { %2137 = vmatprep.subr.bf16.mxu1 %v2336_v6  ;;  %v2163_v20 = vpack.c.bf16 %v1446_v19, %v1445_v18 }
 0x3c6   : > { %1042 = vrot.lane.b32.xlu0 %v1019_v34, %s2339_s0 }
 0x3c8   : > { %v1033_v38 = vld [vmem:[#allocation3 + $0x1a] sm:$0x7f]  ;;  %2139 = vmatpush1.bf16.msra.mxu1 %v2138_v22 }
 0x3c9   : > { %v1032_v36 = vld [vmem:[#allocation3 + $0x12] sm:$0xff]  ;;  %v1031_v37 = vld [vmem:[#allocation3 + $0xa] sm:$0xff]  ;;  %2140 = vmatprep.subr.bf16.mxu1 %v2336_v6  ;;  %v1464_v22 = vld [vmem:[%s3105_s12 + $0xc8] sm:$0xff] }
 0x3ca   : > { %1058 = vrot.lane.b32.xlu0 %v1032_v36, %s3123_s20  ;;  %1056 = vrot.lane.b32.xlu1 %v1031_v37, %s3123_s20  ;;  %v1028_v47 = vld [vmem:[#allocation3 + $0x10] sm:$0xff]  ;;  %v1029_v55 = vld [vmem:[#allocation3 + $0x18] sm:$0x7f]  ;;  %v2165_v23 = vpack.c.bf16 %v1464_v22, %v1463_v21 }
 0x3cc   : > { %2142 = vmatpush1.bf16.msra.mxu1 %v2141_v25  ;;  %v1448_v25 = vld [vmem:[%s3105_s12 + $0x48] sm:$0xff] }
 0x3cd   : > { %2143 = vmatprep.subr.bf16.mxu1 %v2336_v6  ;;  %v2167_v26 = vpack.c.bf16 %v1448_v25, %v1447_v24 }
 0x3ce   : > { %1044 = vrot.lane.b32.xlu1 %v1020_v33, %s2339_s0 }
 0x3d0   : > { %2145 = vmatpush1.bf16.msra.mxu1 %v2144_v28  ;;  %v1466_v28 = vld [vmem:[%s3105_s12 + $0xd8] sm:$0xff] }
 0x3d1   : > { %2146 = vmatprep.subr.bf16.mxu1 %v2336_v6  ;;  %v2169_v29 = vpack.c.bf16 %v1466_v28, %v1465_v27  ;;  %v1366_v28 = vld [vmem:[%s3104_s11 + $0x18] sm:$0x7f] }
 0x3d2   : > { %1060 = vrot.lane.b32.xlu1 %v1033_v38, %s3123_s20 }
 0x3d4   : > { %2148 = vmatpush1.bf16.msra.mxu1 %v2147_v31  ;;  %v1450_v31 = vld [vmem:[%s3105_s12 + $0x58] sm:$0xff] }
 0x42b   : > { %v1041_v44 = vpop.permute.xlu1 %1040 }
 0x42c   : > { %v1039_v39 = vpop.permute.xlu0 %1038  ;;  %v1067_v48 = vsel %vm731_vm8, %v1027_v46, %v1041_v44 }
 0x42d   : > { %v1066_v41 = vsel %vm731_vm8, %v1026_v40, %v1039_v39 }
 0x434   : > { %v1055_v42 = vpop.permute.xlu0 %1054 }
 0x435   : > { %v1070_v43 = vsel %vm895_vm10, %v1066_v41, %v1055_v42 }
 0x436   : > { %2044 = vmatprep.mubr.msk.f32.mxu0 %vm919_vm11, %v1070_v43 }
 0x438   : > { %v1043_v45 = vpop.permute.xlu0 %1042 }
 0x439   : > { %v1068_v49 = vsel %vm731_vm8, %v1028_v47, %v1043_v45 }
 0x43c   : > { %v1057_v50 = vpop.permute.xlu1 %1056  ;;  %v1059_v51 = vpop.permute.xlu0 %1058 }
 0x43d   : > { %v1071_v52 = vsel %vm895_vm10, %v1067_v48, %v1057_v50  ;;  %v1072_v53 = vsel %vm895_vm10, %v1068_v49, %v1059_v51 }
 0x43e   : > { %2045 = vmatmul.mubr.msk.f32.vlgmr.msra.gmra.mrb[10].mxu0 %vm919_vm11, %v1071_v52 }
 0x43f   : > { %2047 = vmatprep.mubr.msk.f32.mxu0 %vm919_vm11, %v1072_v53  ;;  %2152 = vmatpush3.bf16.msra.mxu0 %v2151_v15 }
 0x440   : > { %v1045_v54 = vpop.permute.xlu1 %1044  ;;  %2154 = vmatprep.subr.bf16.mxu0 %v2153_v3 }
 0x441   : > { %v1069_v56 = vsel %vm731_vm8, %v1029_v55, %v1045_v54 }
 0x443   : > { %2156 = vmatpush3.bf16.msra.mxu0 %v2155_v7 }
 0x444   : > { %v1061_v57 = vpop.permute.xlu1 %1060  ;;  %2158 = vmatprep.subr.bf16.mxu0 %v2157_v10 }
 0x445   : > { %v1073_v58 = vsel %vm895_vm10, %v1069_v56, %v1061_v57 }
 0x446   : > { %2048 = vmatmul.mubr.msk.f32.gmra.mrb[12].mxu0 %vm919_vm11, %v1073_v58 }
 0x447   : > { %2160 = vmatpush3.bf16.msra.mxu0 %v2159_v13  ;;  %v1805_v13 = vld [vmem:[%s3104_s11 + $0x50] sm:$0xff] }
 0x448   : > { %2162 = vmatprep.subr.bf16.mxu0 %v2161_v17 }
 0x44b   : > { %2164 = vmatpush3.bf16.msra.mxu0 %v2163_v20 }
 0x44c   : > { %2166 = vmatprep.subr.bf16.mxu0 %v2165_v23 }
 0x44f   : > { %2168 = vmatpush3.bf16.msra.mxu0 %v2167_v26 }
 0x450   : > { %2170 = vmatprep.subr.bf16.mxu0 %v2169_v29 }
 0x511   : > { %v2046_v33 = vpop.f32.mrb[10].mxu0 }
 0x512   : > { %v1177_v34 = vadd.f32 %v2046_v33, %v1789_v32  ;;  %v1171_v35 = vpop.f32.mrb[11].mxu0  ;;  %v1467_v33 = vld [vmem:[%s3105_s12 + $0xe0] sm:$0xff] }
 0x513   : > { %v1172_v36 = vadd.f32 %v1789_v32, %v1171_v35 }
 0x514   : > { %v1191_v37 = vmax.f32 %v1177_v34, 0.0  ;;  %v1468_v34 = vld [vmem:[%s3105_s12 + $0xe8] sm:$0xff] }
 0x515   : > { %v1190_v38 = vmax.f32 %v1172_v36, 0.0  ;;  %v2173_v35 = vpack.c.bf16 %v1468_v34, %v1467_v33  ;;  %v1451_v36 = vld [vmem:[%s3105_s12 + $0x60] sm:$0xff]  ;;  %v1802_v33 = vld [vmem:[%s3104_s11 + $0x38] sm:$0x7f] }
 0x516   : > { %1195 = vst.msk [vmem:[%s524_s23 + $0x8] sm:$0xff] %vm895_vm10, %v1191_v37  ;;  %1200 = vst.msk [vmem:[#allocation4 + $0x9] sm:$0xff] %vm895_vm10, %v1191_v37  ;;  %1217 = vrot.lane.b32.xlu1 %v1191_v37, %s3123_s20  ;;  %v1452_v37 = vld [vmem:[%s3105_s12 + $0x68] sm:$0xff]  ;;  %v1806_v34 = vld [vmem:[%s3104_s11 + $0x58] sm:$0x7f] }
 0x517   : > { %1194 = vst.msk [vmem:[%s524_s23] sm:$0xff] %vm895_vm10, %v1190_v38  ;;  %1199 = vst.msk [vmem:[#allocation4 + $0x1] sm:$0xff] %vm895_vm10, %v1190_v38  ;;  %1215 = vrot.lane.b32.xlu0 %v1190_v38, %s3123_s20  ;;  %v1469_v38 = vld [vmem:[%s3105_s12 + $0xf0] sm:$0xff] }
 0x519   : > { %v2049_v6 = vpop.f32.mrb[12].mxu0 }
 0x51a   : > { %v1187_v39 = vadd.f32 %v2049_v6, %v1789_v32  ;;  %v1181_v40 = vpop.f32.mrb[13].mxu0  ;;  %v2175_v6 = vpack.c.bf16 %v1452_v37, %v1451_v36 }
 0x51b   : > { %v1182_v41 = vadd.f32 %v1789_v32, %v1181_v40  ;;  %v2171_v32 = vpack.c.bf16 %v1450_v31, %v1449_v30  ;;  %v1453_v40 = vld [vmem:[%s3105_s12 + $0x70] sm:$0xff] }
 0x51c   : > { %v1193_v42 = vmax.f32 %v1187_v39, 0.0  ;;  %v1470_v39 = vld [vmem:[%s3105_s12 + $0xf8] sm:$0xff] }
 0x51d   : > { %v1192_v43 = vmax.f32 %v1182_v41, 0.0  ;;  %2172 = vmatpush3.bf16.msra.mxu0 %v2171_v32  ;;  %v1454_v41 = vld [vmem:[%s3105_s12 + $0x78] sm:$0xff] }
 0x51e   : > { %1198 = vst.msk [vmem:[%s524_s23 + $0x18] sm:$0x7f] %vm1197_vm14, %v1193_v42  ;;  %1202 = vst.msk [vmem:[#allocation4 + $0x19] sm:$0x7f] %vm1197_vm14, %v1193_v42  ;;  %1221 = vrot.lane.b32.xlu1 %v1193_v42, %s3123_s20  ;;  %v1207_v44 = vld [vmem:[#allocation4 + $0x2] sm:$0xff]  ;;  %2174 = vmatprep.subr.bf16.mxu0 %v2173_v35  ;;  %v2177_v42 = vpack.c.bf16 %v1470_v39, %v1469_v38 }
 0x51f   : > { %1196 = vst.msk [vmem:[%s524_s23 + $0x10] sm:$0xff] %vm895_vm10, %v1192_v43  ;;  %1201 = vst.msk [vmem:[#allocation4 + $0x11] sm:$0xff] %vm895_vm10, %v1192_v43  ;;  %1795 = vmatprep.mubr.msk.f32.mxu1 %vm895_vm10, %v1207_v44  ;;  %1219 = vrot.lane.b32.xlu0 %v1192_v43, %s3123_s20  ;;  %v1203_v45 = vld [vmem:[#allocation4] sm:$0xff]  ;;  %v1204_v50 = vld [vmem:[#allocation4 + $0x8] sm:$0xff]  ;;  %v2179_v43 = vpack.c.bf16 %v1454_v41, %v1453_v40  ;;  %s502_s20 = scalar_lea.vmem [#allocation5], %s501_s17  ;;  %s2277_s23 = scalar_lea.vmem %s2276_s26, 32 }
 0x520   : > { %v1487_v44 = vld [vmem:[%s3105_s12 + $0x180] sm:$0xff]  ;;  %v1810_v35 = vld [vmem:[%s3104_s11 + $0x78] sm:$0x7f]  ;;  %s1664_s0 = sshll.u32 %s502_s20, 4  ;;  %s3053_s0 = int_to_ptr.vmem [resolvable:$true] %s1664_s0 }
 0x521   : > { %2176 = vmatpush3.bf16.msra.mxu0 %v2175_v6  ;;  %s2271_s1 = scalar_lea.vmem %s3053_s0, 16  ;;  %p2278_p0 = scmp.lt.s32.totalorder %s3053_s0, %s2276_s26 }
 0x522   : > { %2178 = vmatprep.subr.bf16.mxu0 %v2177_v42  ;;  %p2272_p11 = scmp.ne.s32.totalorder %s3053_s0, %s2271_s1  ;;  %p2279_p1 = scmp.lt.s32.totalorder %s2277_s23, %s2271_s1 }
 0x524   : > { %p2273_p12 = pnand %p2272_p11, %p2460_p5  ;;  %p2280_p2 = por %p2279_p1, %p2278_p0 }
 0x525   : > { %v1210_v57 = vld [vmem:[#allocation4 + $0x1a] sm:$0x7f]  ;;  %2180 = vmatpush3.bf16.msra.mxu0 %v2179_v43 }
 0x526   : > { %v1208_v49 = vld [vmem:[#allocation4 + $0xa] sm:$0xff]  ;;  %v1209_v52 = vld [vmem:[#allocation4 + $0x12] sm:$0xff]  ;;  %p2274_p13 = pneg %p2273_p12 }
 0x527   : > { %v1205_v54 = vld [vmem:[#allocation4 + $0x10] sm:$0xff]  ;;  %v1206_v58 = vld [vmem:[#allocation4 + $0x18] sm:$0x7f] }
 0x528   : > { %p2281_p3 = pnand %p2280_p2, %p2274_p13 }
 0x588   : > { %v1218_v48 = vpop.permute.xlu1 %1217 }
 0x589   : > { %v1216_v46 = vpop.permute.xlu0 %1215  ;;  %v1228_v51 = vsel %vm895_vm10, %v1204_v50, %v1218_v48 }
 0x58a   : > { %v1227_v47 = vsel %vm895_vm10, %v1203_v45, %v1216_v46  ;;  %v1488_v45 = vld [vmem:[%s3105_s12 + $0x188] sm:$0xff] }
 0x58b   : > { %1339 = vmatmul.mubr.f32.vlgmr.msra.gmra.mrb[14].mxu1 %v1227_v47  ;;  %v2181_v46 = vpack.c.bf16 %v1488_v45, %v1487_v44  ;;  %v1794_v47 = vld [vmem:[%s3103_s10] ss:$0 sm:$0xff] }
 0x58c   : > { %1796 = vmatprep.mubr.msk.f32.mxu1 %vm895_vm10, %v1208_v49 }
 0x58d   : > { %2182 = vmatprep.subr.bf16.mxu0 %v2181_v46 }
 0x58f   : > { %1344 = vmatmul.mubr.f32.gmra.mrb[16].mxu1 %v1228_v51 }
 0x590   : > { %1797 = vmatprep.mubr.msk.f32.mxu1 %vm895_vm10, %v1209_v52  ;;  %v1222_v56 = vpop.permute.xlu1 %1221 }
 0x591   : > { %v1220_v53 = vpop.permute.xlu0 %1219  ;;  %v1230_v59 = vsel %vm895_vm10, %v1206_v58, %v1222_v56  ;;  %v1803_v56 = vld [vmem:[%s3104_s11 + $0x40] sm:$0xff] }
 0x592   : > { %v1229_v55 = vsel %vm895_vm10, %v1205_v54, %v1220_v53  ;;  %v1363_v53 = vld [vmem:[%s3104_s11] sm:$0xff] }
 0x593   : > { %1349 = vmatmul.mubr.f32.gmra.mrb[18].mxu1 %v1229_v55  ;;  %v1799_v54 = vld [vmem:[%s3104_s11 + $0x20] sm:$0xff] }
 0x594   : > { %1798 = vmatprep.mubr.msk.f32.mxu1 %vm895_vm10, %v1210_v57  ;;  %v1807_v57 = vld [vmem:[%s3104_s11 + $0x60] sm:$0xff] }
 0x597   : > { %1354 = vmatmul.mubr.f32.gmra.mrb[20].mxu1 %v1230_v59  ;;  %v1364_v59 = vld [vmem:[%s3104_s11 + $0x8] sm:$0xff] }
 0x65e   : > { %v1340_v48 = vpop.f32.mrb[14].mxu1 }
 0x65f   : > { %v1341_v49 = vadd.f32 %v1794_v47, %v1340_v48  ;;  %v1342_v50 = vpop.f32.mrb[15].mxu1 }
 0x661   : > { %v1359_v51 = vmax.f32 %v1341_v49, 0.0 }
 0x662   : > { %v1345_v52 = vpop.f32.mrb[16].mxu1 }
 0x663   : > { %v1347_v55 = vpop.f32.mrb[17].mxu1  ;;  %v1346_v58 = vadd.f32 %v1794_v47, %v1345_v52  ;;  %v1367_v63 = vmul.f32 %v1363_v53, %v1359_v51  ;;  %v1387_v1 = vmul.f32 %v1799_v54, %v1359_v51  ;;  %v1406_v2 = vmul.f32 %v1803_v56, %v1359_v51 }
 0x664   : > { %v1425_v3 = vmul.f32 %v1807_v57, %v1359_v51 }
 0x665   : > { %v1360_v0 = vmax.f32 %v1346_v58, 0.0 }
 0x666   : > { %v1350_v15 = vpop.f32.mrb[18].mxu1 }
 0x667   : > { %v1351_v4 = vadd.f32 %v1794_v47, %v1350_v15  ;;  %v1352_v7 = vpop.f32.mrb[19].mxu1  ;;  %v1368_v8 = vmul.f32 %v1364_v59, %v1360_v0  ;;  %v1388_v9 = vmul.f32 %v1800_v60, %v1360_v0  ;;  %v1407_v10 = vmul.f32 %v1804_v61, %v1360_v0  ;;  %v1471_v60 = vld [vmem:[%s3105_s12 + $0x100] sm:$0xff]  ;;  %v1472_v61 = vld [vmem:[%s3105_s12 + $0x108] sm:$0xff]  ;;  %v1489_v15 = vld [vmem:[%s3105_s12 + $0x190] sm:$0xff] }
 0x668   : > { %v1426_v11 = vmul.f32 %v1808_v62, %v1360_v0  ;;  %v1473_v7 = vld [vmem:[%s3105_s12 + $0x110] sm:$0xff] }
 0x669   : > { %v1361_v16 = vmax.f32 %v1351_v4, 0.0  ;;  %v1371_v17 = vadd.f32 %v1368_v8, %v1367_v63  ;;  %v1391_v18 = vadd.f32 %v1388_v9, %v1387_v1  ;;  %v1410_v19 = vadd.f32 %v1407_v10, %v1406_v2  ;;  %v1490_v1 = vld [vmem:[%s3105_s12 + $0x198] sm:$0xff]  ;;  %v1491_v10 = vld [vmem:[%s3105_s12 + $0x1a0] sm:$0xff] }
 0x66a   : > { %v1429_v20 = vadd.f32 %v1426_v11, %v1425_v3  ;;  %v1355_v21 = vpop.f32.mrb[20].mxu1  ;;  %v2183_v4 = vpack.c.bf16 %v1472_v61, %v1471_v60  ;;  %v1474_v8 = vld [vmem:[%s3105_s12 + $0x118] sm:$0xff]  ;;  %v1492_v11 = vld [vmem:[%s3105_s12 + $0x1a8] sm:$0xff] }
 0x66b   : > { %v1369_v22 = vmul.f32 %v1365_v5, %v1361_v16  ;;  %v1389_v23 = vmul.f32 %v1801_v12, %v1361_v16  ;;  %v1408_v24 = vmul.f32 %v1805_v13, %v1361_v16  ;;  %v1427_v25 = vmul.f32 %v1809_v14, %v1361_v16  ;;  %v1357_v26 = vpop.f32.mrb[21].mxu1  ;;  %v1475_v14 = vld [vmem:[%s3105_s12 + $0x120] sm:$0xff]  ;;  %v1476_v16 = vld [vmem:[%s3105_s12 + $0x128] sm:$0xff] }
 0x66c   : > { %v1356_v27 = vadd.f32 %v1794_v47, %v1355_v21  ;;  %v2185_v5 = vpack.c.bf16 %v1490_v1, %v1489_v15  ;;  %v2187_v12 = vpack.c.bf16 %v1474_v8, %v1473_v7  ;;  %v2189_v13 = vpack.c.bf16 %v1492_v11, %v1491_v10  ;;  %v1477_v21 = vld [vmem:[%s3105_s12 + $0x130] sm:$0xff] }
 0x66d   : > { %v1372_v29 = vadd.f32 %v1371_v17, %v1369_v22  ;;  %v1392_v30 = vadd.f32 %v1391_v18, %v1389_v23  ;;  %v1411_v31 = vadd.f32 %v1410_v19, %v1408_v24  ;;  %v1430_v32 = vadd.f32 %v1429_v20, %v1427_v25  ;;  %v1493_v17 = vld [vmem:[%s3105_s12 + $0x1b0] sm:$0xff]  ;;  %v1494_v18 = vld [vmem:[%s3105_s12 + $0x1b8] sm:$0xff]  ;;  %v1495_v23 = vld [vmem:[%s3105_s12 + $0x1c0] sm:$0xff] }
 0x66e   : > { %v1362_v36 = vmax.f32 %v1356_v27, 0.0  ;;  %v2191_v19 = vpack.c.bf16 %v1476_v16, %v1475_v14  ;;  %v2193_v20 = vpack.c.bf16 %v1494_v18, %v1493_v17  ;;  %v1478_v22 = vld [vmem:[%s3105_s12 + $0x138] sm:$0xff]  ;;  %v1496_v24 = vld [vmem:[%s3105_s12 + $0x1c8] sm:$0xff]  ;;  %v1479_v27 = vld [vmem:[%s3105_s12 + $0x140] sm:$0xff] }
 0x66f   : > { %v2195_v25 = vpack.c.bf16 %v1478_v22, %v1477_v21  ;;  %v2197_v26 = vpack.c.bf16 %v1496_v24, %v1495_v23 }
 0x670   : > { %v1370_v37 = vmul.f32 %v1366_v28, %v1362_v36  ;;  %v1390_v38 = vmul.f32 %v1802_v33, %v1362_v36  ;;  %v1409_v6 = vmul.f32 %v1806_v34, %v1362_v36  ;;  %v1428_v39 = vmul.f32 %v1810_v35, %v1362_v36  ;;  %v1480_v28 = vld [vmem:[%s3105_s12 + $0x148] sm:$0xff]  ;;  %v1481_v34 = vld [vmem:[%s3105_s12 + $0x150] sm:$0xff]  ;;  %v1482_v35 = vld [vmem:[%s3105_s12 + $0x158] sm:$0xff] }
 0x672   : > { %v1374_v40 = vsel %vm1373_vm15, %v1370_v37, 0.0  ;;  %v1412_v41 = vsel %vm1373_vm15, %v1409_v6, 0.0  ;;  %v1393_v42 = vsel %vm1373_vm15, %v1390_v38, 0.0  ;;  %v1431_v43 = vsel %vm1373_vm15, %v1428_v39, 0.0  ;;  %v1499_v37 = vld [vmem:[%s3105_s12 + $0x1e0] sm:$0xff]  ;;  %v1500_v38 = vld [vmem:[%s3105_s12 + $0x1e8] sm:$0xff] }
 0x673   : > { %v1375_v44 = vadd.f32 %v1374_v40, %v1372_v29  ;;  %v2949_v45 = vadd.f32 %v1412_v41, %v1411_v31  ;;  %v1394_v46 = vadd.f32 %v1393_v42, %v1392_v30  ;;  %v1432_v47 = vadd.f32 %v1431_v43, %v1430_v32  ;;  %v1497_v30 = vld [vmem:[%s3105_s12 + $0x1d0] sm:$0xff]  ;;  %v1498_v31 = vld [vmem:[%s3105_s12 + $0x1d8] sm:$0xff]  ;;  %v1483_v40 = vld [vmem:[%s3105_s12 + $0x160] sm:$0xff] }
 0x674   : > { %v2199_v32 = vpack.c.bf16 %v1480_v28, %v1479_v27  ;;  %v2201_v33 = vpack.c.bf16 %v1498_v31, %v1497_v30  ;;  %v2203_v6 = vpack.c.bf16 %v1482_v35, %v1481_v34  ;;  %v2205_v39 = vpack.c.bf16 %v1500_v38, %v1499_v37  ;;  %v1484_v41 = vld [vmem:[%s3105_s12 + $0x168] sm:$0xff]  ;;  %v1501_v43 = vld [vmem:[%s3105_s12 + $0x1f0] sm:$0xff] }
 0x675   : > { %v1376_v48 = vrot.slane %v1375_v44, 4  ;;  %v1395_v49 = vrot.slane %v1394_v46, 4  ;;  %v1433_v50 = vrot.slane %v1432_v47, 4  ;;  %v1414_v29 = vrot.slane %v2949_v45, 4 }
 0x677   : > { %v1377_v51 = vadd.f32 %v1376_v48, %v1375_v44  ;;  %v1396_v52 = vadd.f32 %v1395_v49, %v1394_v46  ;;  %v1434_v53 = vadd.f32 %v1433_v50, %v1432_v47  ;;  %v1415_v36 = vadd.f32 %v1414_v29, %v2949_v45  ;;  %v1502_v44 = vld [vmem:[%s3105_s12 + $0x1f8] sm:$0xff]  ;;  %v1485_v47 = vld [vmem:[%s3105_s12 + $0x170] sm:$0xff] }
 0x678   : > { %v2207_v45 = vpack.c.bf16 %v1484_v41, %v1483_v40  ;;  %v2209_v46 = vpack.c.bf16 %v1502_v44, %v1501_v43  ;;  %v1486_v48 = vld [vmem:[%s3105_s12 + $0x178] sm:$0xff] }
 0x679   : > { %v1397_v54 = vrot.slane %v1396_v52, 2  ;;  %v1378_v55 = vrot.slane %v1377_v51, 2  ;;  %v1435_v56 = vrot.slane %v1434_v53, 2  ;;  %v1416_v42 = vrot.slane %v1415_v36, 2 }
 0x67a   : > { %v2211_v50 = vpack.c.bf16 %v1486_v48, %v1485_v47 }
 0x67b   : > { %v1398_v57 = vadd.f32 %v1397_v54, %v1396_v52  ;;  %v1379_v58 = vadd.f32 %v1378_v55, %v1377_v51  ;;  %v1436_v59 = vadd.f32 %v1435_v56, %v1434_v53  ;;  %v1417_v49 = vadd.f32 %v1416_v42, %v1415_v36  ;;  %v1503_v56 = vld [vmem:[%s3106_s13] sm:$0x1] }
 0x67d   : > { %v1399_v62 = vrot.slane %v1398_v57, 1  ;;  %v1380_v63 = vrot.slane %v1379_v58, 1  ;;  %v1437_v0 = vrot.slane %v1436_v59, 1  ;;  %v1418_v51 = vrot.slane %v1417_v49, 1 }
 0x67f   : > { %v1400_v2 = vadd.f32 %v1399_v62, %v1398_v57  ;;  %v1381_v3 = vadd.f32 %v1380_v63, %v1379_v58  ;;  %v1438_v9 = vadd.f32 %v1437_v0, %v1436_v59  ;;  %v1419_v52 = vadd.f32 %v1418_v51, %v1417_v49 }
 0x681   : > { %1568 = vmatprep.mubr.f32.mxu0 %v1400_v2 }
 0x682   : > { %1569 = vmatmul.mubr.f32.vlgmr.msra.gmra.mrb[14].mxu0 %v1381_v3 }
 0x683   : > { %2184 = vmatpush3.bf16.msra.mxu0 %v2183_v4  ;;  %1638 = vmatprep.mubr.f32.mxu0 %v1438_v9 }
 0x684   : > { %2186 = vmatprep.subr.bf16.mxu0 %v2185_v5 }
 0x687   : > { %2188 = vmatpush3.bf16.msra.mxu0 %v2187_v12 }
 0x688   : > { %2190 = vmatprep.subr.bf16.mxu0 %v2189_v13 }
 0x68b   : > { %2192 = vmatpush3.bf16.msra.mxu0 %v2191_v19 }
 0x68c   : > { %2194 = vmatprep.subr.bf16.mxu0 %v2193_v20 }
 0x68f   : > { %2196 = vmatpush3.bf16.msra.mxu0 %v2195_v25 }
 0x690   : > { %2198 = vmatprep.subr.bf16.mxu0 %v2197_v26 }
 0x693   : > { %2200 = vmatpush3.bf16.msra.mxu0 %v2199_v32 }
 0x694   : > { %2202 = vmatprep.subr.bf16.mxu0 %v2201_v33 }
 0x697   : > { %2204 = vmatpush3.bf16.msra.mxu0 %v2203_v6 }
 0x698   : > { %2206 = vmatprep.subr.bf16.mxu0 %v2205_v39 }
 0x69b   : > { %2208 = vmatpush3.bf16.msra.mxu0 %v2207_v45 }
 0x69c   : > { %2210 = vmatprep.subr.bf16.mxu0 %v2209_v46 }
 0x69f   : > { %2212 = vmatpush3.bf16.msra.mxu0 %v2211_v50 }
 0x6a2   : > { %1639 = vmatmul.mubr.f32.vlgmr.msra.gmra.mrb[16].mxu0 %v1419_v52 }
 0x755   : > { %v1900_v53 = vpop.f32.mrb[14].mxu0 }
 0x756   : > { %v1901_v54 = vpop.f32.mrb[15].mxu0 }
 0x757   : > { %v1902_v55 = vadd.f32 %v1901_v54, %v1900_v53 }
 0x759   : > { %v1571_v59 = vadd.f32 %v1902_v55, %v1503_v56 }
 0x775   : > { %v1935_v57 = vpop.f32.mrb[16].mxu0 }
 0x776   : > { %v1936_v58 = vpop.f32.mrb[17].mxu0 }
 0x777   : > { %v1937_v60 = vadd.f32 %v1936_v58, %v1935_v57 }
 0x779   : > { %v1641_v61 = vadd.f32 %v1937_v60, %v1571_v59 }
 0x77b   : > { %1645 = vst.msk [vmem:[%s502_s20] sm:$0x1] %vm1644_vm0, %v1641_v61 }
 0x77c   : > { %2284 = shalt.err (!%p2281_p3)
}
 0x77d   : > { %s2285_s17 = scalar_lea.hbm %s3051_s25, 16  ;;  %s2289_s27 = scalar_lea.hbm %s3107_s14, 32 }
 0x77e   : > { %p2286_p4 = scmp.ne.s32.totalorder %s3051_s25, %s2285_s17  ;;  %p2290_p9 = scmp.lt.u32.totalorder %s3051_s25, %s3107_s14 }
 0x77f   : > { %p2291_p10 = scmp.lt.u32.totalorder %s2289_s27, %s2285_s17  ;;  %p2293_p12 = scmp.lt.u32.totalorder %s2285_s17, %s3051_s25 }
 0x780   : > { %p2287_p7 = pnand %p2286_p4, %p2460_p5 }
 0x781   : > { %p2292_p11 = por %p2291_p10, %p2290_p9 }
 0x782   : > { %p2288_p8 = pneg %p2287_p7 }
 0x783   : > { %p2294_p13 = por %p2293_p12, %p2292_p11 }
 0x785   : > { %p2295_p0 = pnand %p2294_p13, %p2288_p8 }
 0x787   : > { %2298 = shalt.err (!%p2295_p0)
}
 0x788   : > { %2214 = dma.vmem_to_hbm [thread:$0]  (%p2460_p5), %s3053_s0, 16, %s3051_s25, %s1647_s16  }
 0x789 PF: > { %p2220_p1 = scmp.ge.s32.totalorder %s2333_s21, 2  ;;  %s1679_s1 = sand.u32 1, %s2321_s18  }
 0x78a   : > { %s1680_s26 = scalar_lea.sflag [#allocation6], %s1679_s1 }
 0x78b   : > { %p2217_p2 = pnand %p2220_p1, %p2464_p6 }
 0x78d   : > { %2316 = dma.done.wait (!%p2217_p2), %s1680_s26, 16  }
 0x78e   : > { %2318 = vsyncadd (!%p2217_p2), %s1680_s26, 4294967280  ;;  %s3124_s21 = sld [smem:[#allocation9_spill]]  ;;  %s3125_s23 = sld [smem:[#allocation8_spill]] }
 0x78f   : > { %s3126_s20 = sld [smem:[#allocation10_spill]]  ;;  %s3127_s18 = smov %s2325_s19 }
 0x794   : > { %p26_p3 = scmp.ge.s32.totalorder %s3124_s21, 4   ;;  %s3128_s19 = smov %s3125_s23 }
 0x796   :  { %28 = sbr.rel (!%p26_p3) target bundleno = 6 (0x6), region = 129 }
 0x79d   :  { %1692 = vsyncpa [#allocation6], 1 }
 0x79e   :  { %1694 = vsyncpa [#allocation6 + $0x1], 1 }

</bundles_post_ra>
